<compile_context>
chip_gen: v5e
topology: v5e:2x2
jax: 0.10.0
libtpu: 0.0.40
codegen_flags: <defaults>
</compile_context>

<pallas_src>
import functools

import jax
import jax.numpy as jnp
from jax import lax
from jax.experimental import pallas as pl
from jax.experimental.pallas import tpu as pltpu


def _mhsa_kernel(x_ref, mask_ref, wqkv_ref, wo_ref, bqkv_ref, bo_ref,
                 out_ref, ctx_ref, *, num_heads, scaling):
    # x_ref:    (1, S, H)   hidden states for this batch element (compute dtype)
    # mask_ref: (1, 1, S)   additive attention mask (f32; 0 keep, -1e9 masked)
    # wqkv_ref: (H, 3H)     packed q|k|v projection weights (x @ W convention)
    # wo_ref:   (H, H)      output projection weight
    # bqkv_ref: (1, 3H) f32 packed q|k|v biases
    # bo_ref:   (1, H)  f32 output bias
    # out_ref:  (1, S, H) f32
    # ctx_ref:  (S, H)  f32 VMEM scratch for the per-head contexts
    f32 = jnp.float32
    mm_dtype = x_ref.dtype                 # MXU operand dtype (bf16 or f32)

    s, h = ctx_ref.shape
    hd = h // num_heads

    x = x_ref[0]                           # (S, H)

    # Fused QKV projection: one (S,H) @ (H,3H) MXU matmul, f32 accumulation.
    qkv = jnp.dot(x, wqkv_ref[...], preferred_element_type=f32) + bqkv_ref[...]

    # Fold the 1/sqrt(hd) attention scaling into q (cheap: S*H multiplies).
    q = (qkv[:, :h] * scaling).astype(mm_dtype)
    k = qkv[:, h:2 * h].astype(mm_dtype)
    v = qkv[:, 2 * h:].astype(mm_dtype)

    # Hoist the additive-mask broadcast out of the head unroll.
    mask = jnp.broadcast_to(mask_ref[0], (s, s))          # (S, S), f32

    for head in range(num_heads):          # static unroll over heads
        sl = slice(head * hd, (head + 1) * hd)
        qh, kh, vh = q[:, sl], k[:, sl], v[:, sl]

        # scores = (q*scaling)_h @ k_h^T  -> (S, S), MXU with f32 accumulation.
        scores = lax.dot_general(qh, kh, (((1,), (1,)), ((), ())),
                                 preferred_element_type=f32)
        scores = scores + mask

        # Numerically-stable softmax in f32; normalization deferred past p @ v
        # so the divide touches (S, hd) instead of (S, S) elements and the
        # reciprocal goes to the EUP slot.
        scores = scores - jnp.max(scores, axis=-1, keepdims=True)
        p = jnp.exp(scores)
        l = jnp.sum(p, axis=-1, keepdims=True)            # (S, 1)

        ctx_h = jnp.dot(p.astype(mm_dtype), vh, preferred_element_type=f32)
        ctx_ref[:, sl] = ctx_h * pl.reciprocal(l, approx=True)

    # Output projection from the lane-dense (S, H) context scratch slab.
    # (A per-head pre-transposed K scratch is a further, bundle-dump-guided
    #  option if the per-head kh transpose ever surfaces on the critical path.)
    out = jnp.dot(ctx_ref[...].astype(mm_dtype), wo_ref[...],
                  preferred_element_type=f32) + bo_ref[...]
    out_ref[0] = out.astype(out_ref.dtype)


def _vmem_limit_bytes(s, h, mm_bytes):
    """Rough resident-footprint estimate with 2x headroom, clamped to a range
    that is valid on every TPU generation (>= default, <= v7x physical)."""
    act = 2 * s * h * mm_bytes + 2 * s * h * 4 + 2 * s * 4        # x/out/mask (dbl-buf)
    wgt = (3 * h * h + h * h) * mm_bytes + 4 * h * 4              # single-buffered
    inter = s * 3 * h * 4 + 3 * s * h * mm_bytes + 2 * s * s * 4 + s * h * 4
    need = 2 * (act + wgt + inter)
    return int(min(max(need, 32 * 1024 * 1024), 64 * 1024 * 1024))


def _mhsa_pallas(xc, mask3, wqkv, wo, bqkv, bo, *, num_heads, scaling,
                 single_buffer_weights):
    b, s, h = xc.shape

    if single_buffer_weights:
        def cspec(shape):
            # Constant index_map -> one buffer is enough; saves VMEM.
            return pl.BlockSpec(shape, lambda i: (0,) * len(shape),
                                pipeline_mode=pl.Buffered(1))
    else:
        def cspec(shape):
            return pl.BlockSpec(shape, lambda i: (0,) * len(shape))

    kernel = functools.partial(_mhsa_kernel, num_heads=num_heads,
                               scaling=scaling)
    mm_bytes = jnp.dtype(xc.dtype).itemsize

    return pl.pallas_call(
        kernel,
        out_shape=jax.ShapeDtypeStruct((b, s, h), jnp.float32),
        grid_spec=pltpu.PrefetchScalarGridSpec(
            num_scalar_prefetch=0,
            grid=(b,),
            in_specs=[
                pl.BlockSpec((1, s, h), lambda i: (i, 0, 0)),    # x tile
                pl.BlockSpec((1, 1, s), lambda i: (i, 0, 0)),    # mask tile
                cspec((h, 3 * h)),                               # packed Wqkv
                cspec((h, h)),                                   # Wo
                cspec((1, 3 * h)),                               # packed bqkv
                cspec((1, h)),                                   # bo
            ],
            out_specs=pl.BlockSpec((1, s, h), lambda i: (i, 0, 0)),
            scratch_shapes=[pltpu.VMEM((s, h), jnp.float32)],    # ctx slab
        ),
        compiler_params=pltpu.CompilerParams(
            # Batch axis is embarrassingly parallel -> megacore sharding on
            # v7x (assumes B >= 2; with B == 1 one TC idles).
            dimension_semantics=("parallel",),
            vmem_limit_bytes=_vmem_limit_bytes(s, h, mm_bytes),
        ),
    )(xc, mask3, wqkv, wo, bqkv, bo)


def multi_head_self_attention(x, attn_mask, params, *, num_heads,
                              compute_dtype=jnp.bfloat16):
    """x: [B, S, H] f32; attn_mask: [B, S] additive f32 (0 keep, -1e9 mask).

    params: dict with 'wq','wk','wv','wo' of shape [H, H] (x @ W convention)
    and 'bq','bk','bv','bo' of shape [H].  Returns [B, S, H] f32.
    compute_dtype controls the MXU operand dtype (accumulation stays f32)."""
    b, s, h = x.shape
    assert h % num_heads == 0, "hidden_size must be divisible by num_heads"
    scaling = float((h // num_heads) ** -0.5)

    # Pack QKV into one (H, 3H) weight / (1, 3H) bias -> single fused matmul
    # in the kernel; matmul operands go to compute_dtype (bf16 by default),
    # biases / mask / accumulation / softmax stay f32.
    wqkv = jnp.concatenate([params["wq"], params["wk"], params["wv"]],
                           axis=1).astype(compute_dtype)
    wo = params["wo"].astype(compute_dtype)
    bqkv = jnp.concatenate([params["bq"], params["bk"], params["bv"]],
                           axis=0).reshape(1, 3 * h).astype(jnp.float32)
    bo = params["bo"].reshape(1, h).astype(jnp.float32)
    mask3 = attn_mask.reshape(b, 1, s).astype(jnp.float32)
    xc = x.astype(compute_dtype)

    try:
        return _mhsa_pallas(xc, mask3, wqkv, wo, bqkv, bo,
                            num_heads=num_heads, scaling=scaling,
                            single_buffer_weights=True)
    except Exception:
        # pl.Buffered(1) not supported by this jax/Mosaic build -> fall back
        # to default double-buffered weight pipeline (correctness unaffected).
        return _mhsa_pallas(xc, mask3, wqkv, wo, bqkv, bo,
                            num_heads=num_heads, scaling=scaling,
                            single_buffer_weights=False)


def _mhsa_ref(x, attn_mask, params, *, num_heads):
    """Plain-JAX f32 reference matching the PyTorch module (eval mode)."""
    b, s, h = x.shape
    hd = h // num_heads
    scaling = hd ** -0.5
    q = x @ params["wq"] + params["bq"]
    k = x @ params["wk"] + params["bk"]
    v = x @ params["wv"] + params["bv"]
    q = q.reshape(b, s, num_heads, hd).transpose(0, 2, 1, 3)
    k = k.reshape(b, s, num_heads, hd).transpose(0, 2, 1, 3)
    v = v.reshape(b, s, num_heads, hd).transpose(0, 2, 1, 3)
    scores = jnp.einsum("bhqd,bhkd->bhqk", q, k) * scaling
    scores = scores + attn_mask[:, None, None, :]
    p = jax.nn.softmax(scores, axis=-1)
    ctx = jnp.einsum("bhqk,bhkd->bhqd", p, v)
    ctx = ctx.transpose(0, 2, 1, 3).reshape(b, s, h)
    return ctx @ params["wo"] + params["bo"]


if __name__ == "__main__":
    # Small, deterministic shapes consistent with the module's forward.
    batch, seq_len, hidden, num_heads = 2, 8, 32, 4

    key = jax.random.PRNGKey(0)
    ks = jax.random.split(key, 10)

    def init(k, shape):
        return jax.random.normal(k, shape, dtype=jnp.float32) / jnp.sqrt(
            jnp.float32(hidden))

    params = {
        "wq": init(ks[0], (hidden, hidden)), "bq": init(ks[1], (hidden,)),
        "wk": init(ks[2], (hidden, hidden)), "bk": init(ks[3], (hidden,)),
        "wv": init(ks[4], (hidden, hidden)), "bv": init(ks[5], (hidden,)),
        "wo": init(ks[6], (hidden, hidden)), "bo": init(ks[7], (hidden,)),
    }
    x = jax.random.normal(ks[8], (batch, seq_len, hidden), dtype=jnp.float32)

    # Additive key-padding mask: 0 = attend, -1e9 = masked.
    keep = jax.random.bernoulli(ks[9], 0.8, (batch, seq_len))
    keep = keep.at[:, 0].set(True)  # guarantee at least one attendable key
    attn_mask = jnp.where(keep, 0.0, -1e9).astype(jnp.float32)

    ref = _mhsa_ref(x, attn_mask, params, num_heads=num_heads)

    # 1) f32-operand path: tight structural/semantic check.
    out_f32 = multi_head_self_attention(x, attn_mask, params,
                                        num_heads=num_heads,
                                        compute_dtype=jnp.float32)
    out_f32 = jax.block_until_ready(out_f32)
    assert out_f32.shape == (batch, seq_len, hidden)
    assert out_f32.dtype == jnp.float32
    err_f32 = float(jnp.max(jnp.abs(out_f32 - ref)))
    assert jnp.allclose(out_f32, ref, atol=5e-3, rtol=5e-3), (
        f"f32 path max abs err = {err_f32}")

    # 2) Default bf16-operand / f32-accumulate path (MXU-rate): looser tol.
    out_bf16 = multi_head_self_attention(x, attn_mask, params,
                                         num_heads=num_heads)
    out_bf16 = jax.block_until_ready(out_bf16)
    assert out_bf16.shape == (batch, seq_len, hidden)
    assert out_bf16.dtype == jnp.float32
    err_bf16 = float(jnp.max(jnp.abs(out_bf16 - ref)))
    assert jnp.allclose(out_bf16, ref, atol=5e-2, rtol=5e-2), (
        f"bf16 path max abs err = {err_bf16}")

    print("KERNEL_OK")
</pallas_src>

<mosaic_0001>
module attributes {stable_mosaic.version = 11 : i64} {
  func.func @_mhsa_kernel(%arg0: i32, %arg1: memref<1x8x32xf32, #tpu.memory_space<vmem>>, %arg2: memref<1x1x8xf32, #tpu.memory_space<vmem>>, %arg3: memref<32x96xf32, #tpu.memory_space<vmem>>, %arg4: memref<32x32xf32, #tpu.memory_space<vmem>>, %arg5: memref<1x96xf32, #tpu.memory_space<vmem>>, %arg6: memref<1x32xf32, #tpu.memory_space<vmem>>, %arg7: memref<1x8x32xf32, #tpu.memory_space<vmem>>, %arg8: memref<8x32xf32, #tpu.memory_space<vmem>>) attributes {dimension_semantics = [#tpu.dimension_semantics<parallel>], iteration_bounds = array<i64: 2>, scalar_prefetch = 0 : i64, scratch_operands = 1 : i64, tpu.core_type = #tpu.core_type<tc>, window_params = [{transform_indices = @transform_0, window_bounds = array<i64: 1, 8, 32>}, {transform_indices = @transform_1, window_bounds = array<i64: 1, 1, 8>}, {pipeline_mode = #tpu.pipeline_mode<synchronous>, transform_indices = @transform_2, window_bounds = array<i64: 32, 96>}, {pipeline_mode = #tpu.pipeline_mode<synchronous>, transform_indices = @transform_3, window_bounds = array<i64: 32, 32>}, {pipeline_mode = #tpu.pipeline_mode<synchronous>, transform_indices = @transform_4, window_bounds = array<i64: 1, 96>}, {pipeline_mode = #tpu.pipeline_mode<synchronous>, transform_indices = @transform_5, window_bounds = array<i64: 1, 32>}, {transform_indices = @transform_6, window_bounds = array<i64: 1, 8, 32>}]} {
    %c0 = arith.constant 0 : index
    %c0_0 = arith.constant 0 : index
    %c0_1 = arith.constant 0 : index
    %0 = vector.load %arg1[%c0, %c0_0, %c0_1] : memref<1x8x32xf32, #tpu.memory_space<vmem>>, vector<1x8x32xf32>
    %1 = vector.shape_cast %0 : vector<1x8x32xf32> to vector<8x32xf32>
    %c0_2 = arith.constant 0 : index
    %c0_3 = arith.constant 0 : index
    %2 = vector.load %arg3[%c0_2, %c0_3] : memref<32x96xf32, #tpu.memory_space<vmem>>, vector<32x96xf32>
    %cst = arith.constant dense<0.000000e+00> : vector<8x96xf32>
    %3 = tpu.matmul %1, %2, %cst {dimension_numbers = #tpu.dot_dimension_numbers<[1], [0], [0], [1], [0, 0, 1, 1], [], []>} : vector<8x32xf32>, vector<32x96xf32>, vector<8x96xf32> -> vector<8x96xf32>
    %c0_4 = arith.constant 0 : index
    %c0_5 = arith.constant 0 : index
    %4 = vector.load %arg5[%c0_4, %c0_5] : memref<1x96xf32, #tpu.memory_space<vmem>>, vector<1x96xf32>
    %5 = vector.broadcast %4 : vector<1x96xf32> to vector<8x96xf32>
    %6 = arith.addf %3, %5 : vector<8x96xf32>
    %7 = vector.extract_strided_slice %6 {offsets = [0, 0], sizes = [8, 32], strides = [1, 1]} : vector<8x96xf32> to vector<8x32xf32>
    %cst_6 = arith.constant 0.353553385 : f32
    %8 = vector.broadcast %cst_6 : f32 to vector<8x32xf32>
    %9 = arith.mulf %7, %8 : vector<8x32xf32>
    %10 = vector.extract_strided_slice %6 {offsets = [0, 32], sizes = [8, 32], strides = [1, 1]} : vector<8x96xf32> to vector<8x32xf32>
    %11 = vector.extract_strided_slice %6 {offsets = [0, 64], sizes = [8, 32], strides = [1, 1]} : vector<8x96xf32> to vector<8x32xf32>
    %c0_7 = arith.constant 0 : index
    %c0_8 = arith.constant 0 : index
    %c0_9 = arith.constant 0 : index
    %12 = vector.load %arg2[%c0_7, %c0_8, %c0_9] : memref<1x1x8xf32, #tpu.memory_space<vmem>>, vector<1x1x8xf32>
    %13 = vector.shape_cast %12 : vector<1x1x8xf32> to vector<1x8xf32>
    %14 = vector.shape_cast %13 : vector<1x8xf32> to vector<1x8xf32>
    %15 = vector.broadcast %14 : vector<1x8xf32> to vector<8x8xf32>
    %16 = vector.extract_strided_slice %9 {offsets = [0, 0], sizes = [8, 8], strides = [1, 1]} : vector<8x32xf32> to vector<8x8xf32>
    %17 = vector.extract_strided_slice %10 {offsets = [0, 0], sizes = [8, 8], strides = [1, 1]} : vector<8x32xf32> to vector<8x8xf32>
    %18 = vector.extract_strided_slice %11 {offsets = [0, 0], sizes = [8, 8], strides = [1, 1]} : vector<8x32xf32> to vector<8x8xf32>
    %cst_10 = arith.constant dense<0.000000e+00> : vector<8x8xf32>
    %19 = tpu.matmul %16, %17, %cst_10 {dimension_numbers = #tpu.dot_dimension_numbers<[1], [1], [0], [0], [0, 0, 1, 0], [], []>} : vector<8x8xf32>, vector<8x8xf32>, vector<8x8xf32> -> vector<8x8xf32>
    %20 = arith.addf %19, %15 : vector<8x8xf32>
    %cst_11 = arith.constant dense<0xFF800000> : vector<8xf32>
    %21 = vector.multi_reduction <maximumf>, %20, %cst_11 [1] : vector<8x8xf32> to vector<8xf32>
    %22 = vector.shape_cast %21 : vector<8xf32> to vector<8x1xf32>
    %23 = vector.broadcast %22 : vector<8x1xf32> to vector<8x8xf32>
    %24 = arith.subf %20, %23 : vector<8x8xf32>
    %25 = math.exp %24 : vector<8x8xf32>
    %cst_12 = arith.constant dense<0.000000e+00> : vector<8xf32>
    %26 = vector.multi_reduction <add>, %25, %cst_12 [1] : vector<8x8xf32> to vector<8xf32>
    %27 = vector.shape_cast %26 : vector<8xf32> to vector<8x1xf32>
    %cst_13 = arith.constant dense<0.000000e+00> : vector<8x8xf32>
    %28 = tpu.matmul %25, %18, %cst_13 {dimension_numbers = #tpu.dot_dimension_numbers<[1], [0], [0], [1], [0, 0, 1, 1], [], []>} : vector<8x8xf32>, vector<8x8xf32>, vector<8x8xf32> -> vector<8x8xf32>
    %29 = tpu.reciprocal %27 {approx = true} : vector<8x1xf32> -> vector<8x1xf32>
    %30 = vector.broadcast %29 : vector<8x1xf32> to vector<8x8xf32>
    %31 = arith.mulf %28, %30 : vector<8x8xf32>
    %c0_14 = arith.constant 0 : index
    %c0_15 = arith.constant 0 : index
    %32 = vector.load %arg8[%c0_14, %c0_15] : memref<8x32xf32, #tpu.memory_space<vmem>>, vector<8x8xf32>
    tpu.vector_store %arg8[%c0_14, %c0_15], %31 {strides = array<i32>} : memref<8x32xf32, #tpu.memory_space<vmem>>, vector<8x8xf32>,
    %33 = vector.extract_strided_slice %9 {offsets = [0, 8], sizes = [8, 8], strides = [1, 1]} : vector<8x32xf32> to vector<8x8xf32>
    %34 = vector.extract_strided_slice %10 {offsets = [0, 8], sizes = [8, 8], strides = [1, 1]} : vector<8x32xf32> to vector<8x8xf32>
    %35 = vector.extract_strided_slice %11 {offsets = [0, 8], sizes = [8, 8], strides = [1, 1]} : vector<8x32xf32> to vector<8x8xf32>
    %cst_16 = arith.constant dense<0.000000e+00> : vector<8x8xf32>
    %36 = tpu.matmul %33, %34, %cst_16 {dimension_numbers = #tpu.dot_dimension_numbers<[1], [1], [0], [0], [0, 0, 1, 0], [], []>} : vector<8x8xf32>, vector<8x8xf32>, vector<8x8xf32> -> vector<8x8xf32>
    %37 = arith.addf %36, %15 : vector<8x8xf32>
    %cst_17 = arith.constant dense<0xFF800000> : vector<8xf32>
    %38 = vector.multi_reduction <maximumf>, %37, %cst_17 [1] : vector<8x8xf32> to vector<8xf32>
    %39 = vector.shape_cast %38 : vector<8xf32> to vector<8x1xf32>
    %40 = vector.broadcast %39 : vector<8x1xf32> to vector<8x8xf32>
    %41 = arith.subf %37, %40 : vector<8x8xf32>
    %42 = math.exp %41 : vector<8x8xf32>
    %cst_18 = arith.constant dense<0.000000e+00> : vector<8xf32>
    %43 = vector.multi_reduction <add>, %42, %cst_18 [1] : vector<8x8xf32> to vector<8xf32>
    %44 = vector.shape_cast %43 : vector<8xf32> to vector<8x1xf32>
    %cst_19 = arith.constant dense<0.000000e+00> : vector<8x8xf32>
    %45 = tpu.matmul %42, %35, %cst_19 {dimension_numbers = #tpu.dot_dimension_numbers<[1], [0], [0], [1], [0, 0, 1, 1], [], []>} : vector<8x8xf32>, vector<8x8xf32>, vector<8x8xf32> -> vector<8x8xf32>
    %46 = tpu.reciprocal %44 {approx = true} : vector<8x1xf32> -> vector<8x1xf32>
    %47 = vector.broadcast %46 : vector<8x1xf32> to vector<8x8xf32>
    %48 = arith.mulf %45, %47 : vector<8x8xf32>
    %c0_20 = arith.constant 0 : index
    %c8 = arith.constant 8 : index
    %49 = vector.load %arg8[%c0_20, %c8] : memref<8x32xf32, #tpu.memory_space<vmem>>, vector<8x8xf32>
    tpu.vector_store %arg8[%c0_20, %c8], %48 {strides = array<i32>} : memref<8x32xf32, #tpu.memory_space<vmem>>, vector<8x8xf32>,
    %50 = vector.extract_strided_slice %9 {offsets = [0, 16], sizes = [8, 8], strides = [1, 1]} : vector<8x32xf32> to vector<8x8xf32>
    %51 = vector.extract_strided_slice %10 {offsets = [0, 16], sizes = [8, 8], strides = [1, 1]} : vector<8x32xf32> to vector<8x8xf32>
    %52 = vector.extract_strided_slice %11 {offsets = [0, 16], sizes = [8, 8], strides = [1, 1]} : vector<8x32xf32> to vector<8x8xf32>
    %cst_21 = arith.constant dense<0.000000e+00> : vector<8x8xf32>
    %53 = tpu.matmul %50, %51, %cst_21 {dimension_numbers = #tpu.dot_dimension_numbers<[1], [1], [0], [0], [0, 0, 1, 0], [], []>} : vector<8x8xf32>, vector<8x8xf32>, vector<8x8xf32> -> vector<8x8xf32>
    %54 = arith.addf %53, %15 : vector<8x8xf32>
    %cst_22 = arith.constant dense<0xFF800000> : vector<8xf32>
    %55 = vector.multi_reduction <maximumf>, %54, %cst_22 [1] : vector<8x8xf32> to vector<8xf32>
    %56 = vector.shape_cast %55 : vector<8xf32> to vector<8x1xf32>
    %57 = vector.broadcast %56 : vector<8x1xf32> to vector<8x8xf32>
    %58 = arith.subf %54, %57 : vector<8x8xf32>
    %59 = math.exp %58 : vector<8x8xf32>
    %cst_23 = arith.constant dense<0.000000e+00> : vector<8xf32>
    %60 = vector.multi_reduction <add>, %59, %cst_23 [1] : vector<8x8xf32> to vector<8xf32>
    %61 = vector.shape_cast %60 : vector<8xf32> to vector<8x1xf32>
    %cst_24 = arith.constant dense<0.000000e+00> : vector<8x8xf32>
    %62 = tpu.matmul %59, %52, %cst_24 {dimension_numbers = #tpu.dot_dimension_numbers<[1], [0], [0], [1], [0, 0, 1, 1], [], []>} : vector<8x8xf32>, vector<8x8xf32>, vector<8x8xf32> -> vector<8x8xf32>
    %63 = tpu.reciprocal %61 {approx = true} : vector<8x1xf32> -> vector<8x1xf32>
    %64 = vector.broadcast %63 : vector<8x1xf32> to vector<8x8xf32>
    %65 = arith.mulf %62, %64 : vector<8x8xf32>
    %c0_25 = arith.constant 0 : index
    %c16 = arith.constant 16 : index
    %66 = vector.load %arg8[%c0_25, %c16] : memref<8x32xf32, #tpu.memory_space<vmem>>, vector<8x8xf32>
    tpu.vector_store %arg8[%c0_25, %c16], %65 {strides = array<i32>} : memref<8x32xf32, #tpu.memory_space<vmem>>, vector<8x8xf32>,
    %67 = vector.extract_strided_slice %9 {offsets = [0, 24], sizes = [8, 8], strides = [1, 1]} : vector<8x32xf32> to vector<8x8xf32>
    %68 = vector.extract_strided_slice %10 {offsets = [0, 24], sizes = [8, 8], strides = [1, 1]} : vector<8x32xf32> to vector<8x8xf32>
    %69 = vector.extract_strided_slice %11 {offsets = [0, 24], sizes = [8, 8], strides = [1, 1]} : vector<8x32xf32> to vector<8x8xf32>
    %cst_26 = arith.constant dense<0.000000e+00> : vector<8x8xf32>
    %70 = tpu.matmul %67, %68, %cst_26 {dimension_numbers = #tpu.dot_dimension_numbers<[1], [1], [0], [0], [0, 0, 1, 0], [], []>} : vector<8x8xf32>, vector<8x8xf32>, vector<8x8xf32> -> vector<8x8xf32>
    %71 = arith.addf %70, %15 : vector<8x8xf32>
    %cst_27 = arith.constant dense<0xFF800000> : vector<8xf32>
    %72 = vector.multi_reduction <maximumf>, %71, %cst_27 [1] : vector<8x8xf32> to vector<8xf32>
    %73 = vector.shape_cast %72 : vector<8xf32> to vector<8x1xf32>
    %74 = vector.broadcast %73 : vector<8x1xf32> to vector<8x8xf32>
    %75 = arith.subf %71, %74 : vector<8x8xf32>
    %76 = math.exp %75 : vector<8x8xf32>
    %cst_28 = arith.constant dense<0.000000e+00> : vector<8xf32>
    %77 = vector.multi_reduction <add>, %76, %cst_28 [1] : vector<8x8xf32> to vector<8xf32>
    %78 = vector.shape_cast %77 : vector<8xf32> to vector<8x1xf32>
    %cst_29 = arith.constant dense<0.000000e+00> : vector<8x8xf32>
    %79 = tpu.matmul %76, %69, %cst_29 {dimension_numbers = #tpu.dot_dimension_numbers<[1], [0], [0], [1], [0, 0, 1, 1], [], []>} : vector<8x8xf32>, vector<8x8xf32>, vector<8x8xf32> -> vector<8x8xf32>
    %80 = tpu.reciprocal %78 {approx = true} : vector<8x1xf32> -> vector<8x1xf32>
    %81 = vector.broadcast %80 : vector<8x1xf32> to vector<8x8xf32>
    %82 = arith.mulf %79, %81 : vector<8x8xf32>
    %c0_30 = arith.constant 0 : index
    %c24 = arith.constant 24 : index
    %83 = vector.load %arg8[%c0_30, %c24] : memref<8x32xf32, #tpu.memory_space<vmem>>, vector<8x8xf32>
    tpu.vector_store %arg8[%c0_30, %c24], %82 {strides = array<i32>} : memref<8x32xf32, #tpu.memory_space<vmem>>, vector<8x8xf32>,
    %c0_31 = arith.constant 0 : index
    %c0_32 = arith.constant 0 : index
    %84 = vector.load %arg8[%c0_31, %c0_32] : memref<8x32xf32, #tpu.memory_space<vmem>>, vector<8x32xf32>
    %c0_33 = arith.constant 0 : index
    %c0_34 = arith.constant 0 : index
    %85 = vector.load %arg4[%c0_33, %c0_34] : memref<32x32xf32, #tpu.memory_space<vmem>>, vector<32x32xf32>
    %cst_35 = arith.constant dense<0.000000e+00> : vector<8x32xf32>
    %86 = tpu.matmul %84, %85, %cst_35 {dimension_numbers = #tpu.dot_dimension_numbers<[1], [0], [0], [1], [0, 0, 1, 1], [], []>} : vector<8x32xf32>, vector<32x32xf32>, vector<8x32xf32> -> vector<8x32xf32>
    %c0_36 = arith.constant 0 : index
    %c0_37 = arith.constant 0 : index
    %87 = vector.load %arg6[%c0_36, %c0_37] : memref<1x32xf32, #tpu.memory_space<vmem>>, vector<1x32xf32>
    %88 = vector.broadcast %87 : vector<1x32xf32> to vector<8x32xf32>
    %89 = arith.addf %86, %88 : vector<8x32xf32>
    %c0_38 = arith.constant 0 : index
    %c0_39 = arith.constant 0 : index
    %c0_40 = arith.constant 0 : index
    %90 = vector.load %arg7[%c0_38, %c0_39, %c0_40] : memref<1x8x32xf32, #tpu.memory_space<vmem>>, vector<1x8x32xf32>
    %91 = vector.shape_cast %90 : vector<1x8x32xf32> to vector<8x32xf32>
    %92 = vector.shape_cast %89 : vector<8x32xf32> to vector<1x8x32xf32>
    tpu.vector_store %arg7[%c0_38, %c0_39, %c0_40], %92 {strides = array<i32>} : memref<1x8x32xf32, #tpu.memory_space<vmem>>, vector<1x8x32xf32>,
    return
  }
  func.func @transform_0(%arg0: i32) -> (i32, i32, i32) {
    %c0_i32 = arith.constant 0 : i32
    %c0_i32_0 = arith.constant 0 : i32
    %c0_i32_1 = arith.constant 0 : i32
    return %arg0, %c0_i32, %c0_i32_0 : i32, i32, i32
  }
  func.func @transform_1(%arg0: i32) -> (i32, i32, i32) {
    %c0_i32 = arith.constant 0 : i32
    %c0_i32_0 = arith.constant 0 : i32
    %c0_i32_1 = arith.constant 0 : i32
    return %arg0, %c0_i32, %c0_i32_0 : i32, i32, i32
  }
  func.func @transform_2(%arg0: i32) -> (i32, i32) {
    %c0_i32 = arith.constant 0 : i32
    %c0_i32_0 = arith.constant 0 : i32
    %c0_i32_1 = arith.constant 0 : i32
    return %c0_i32, %c0_i32_0 : i32, i32
  }
  func.func @transform_3(%arg0: i32) -> (i32, i32) {
    %c0_i32 = arith.constant 0 : i32
    %c0_i32_0 = arith.constant 0 : i32
    %c0_i32_1 = arith.constant 0 : i32
    return %c0_i32, %c0_i32_0 : i32, i32
  }
  func.func @transform_4(%arg0: i32) -> (i32, i32) {
    %c0_i32 = arith.constant 0 : i32
    %c0_i32_0 = arith.constant 0 : i32
    %c0_i32_1 = arith.constant 0 : i32
    return %c0_i32, %c0_i32_0 : i32, i32
  }
  func.func @transform_5(%arg0: i32) -> (i32, i32) {
    %c0_i32 = arith.constant 0 : i32
    %c0_i32_0 = arith.constant 0 : i32
    %c0_i32_1 = arith.constant 0 : i32
    return %c0_i32, %c0_i32_0 : i32, i32
  }
  func.func @transform_6(%arg0: i32) -> (i32, i32, i32) {
    %c0_i32 = arith.constant 0 : i32
    %c0_i32_0 = arith.constant 0 : i32
    %c0_i32_1 = arith.constant 0 : i32
    return %arg0, %c0_i32, %c0_i32_0 : i32, i32, i32
  }
}

module attributes {stable_mosaic.version = 11 : i64} {
  func.func @_mhsa_kernel(%arg0: i32, %arg1: memref<1x8x32xf32, #tpu.memory_space<vmem>>, %arg2: memref<1x1x8xf32, #tpu.memory_space<vmem>>, %arg3: memref<32x96xf32, #tpu.memory_space<vmem>>, %arg4: memref<32x32xf32, #tpu.memory_space<vmem>>, %arg5: memref<1x96xf32, #tpu.memory_space<vmem>>, %arg6: memref<1x32xf32, #tpu.memory_space<vmem>>, %arg7: memref<1x8x32xf32, #tpu.memory_space<vmem>>, %arg8: memref<8x32xf32, #tpu.memory_space<vmem>>) attributes {dimension_semantics = [#tpu.dimension_semantics<parallel>], iteration_bounds = array<i64: 2>, scalar_prefetch = 0 : i64, scratch_operands = 1 : i64, tpu.core_type = #tpu.core_type<tc>, window_params = [{transform_indices = @transform_0, window_bounds = array<i64: 1, 8, 32>}, {transform_indices = @transform_1, window_bounds = array<i64: 1, 1, 8>}, {pipeline_mode = #tpu.pipeline_mode<synchronous>, transform_indices = @transform_2, window_bounds = array<i64: 32, 96>}, {pipeline_mode = #tpu.pipeline_mode<synchronous>, transform_indices = @transform_3, window_bounds = array<i64: 32, 32>}, {pipeline_mode = #tpu.pipeline_mode<synchronous>, transform_indices = @transform_4, window_bounds = array<i64: 1, 96>}, {pipeline_mode = #tpu.pipeline_mode<synchronous>, transform_indices = @transform_5, window_bounds = array<i64: 1, 32>}, {transform_indices = @transform_6, window_bounds = array<i64: 1, 8, 32>}]} {
    %c0 = arith.constant 0 : index
    %c0_0 = arith.constant 0 : index
    %c0_1 = arith.constant 0 : index
    %0 = vector.load %arg1[%c0, %c0_0, %c0_1] : memref<1x8x32xf32, #tpu.memory_space<vmem>>, vector<1x8x32xf32>
    %1 = vector.shape_cast %0 : vector<1x8x32xf32> to vector<8x32xf32>
    %c0_2 = arith.constant 0 : index
    %c0_3 = arith.constant 0 : index
    %2 = vector.load %arg3[%c0_2, %c0_3] : memref<32x96xf32, #tpu.memory_space<vmem>>, vector<32x96xf32>
    %cst = arith.constant dense<0.000000e+00> : vector<8x96xf32>
    %3 = tpu.matmul %1, %2, %cst {dimension_numbers = #tpu.dot_dimension_numbers<[1], [0], [0], [1], [0, 0, 1, 1], [], []>} : vector<8x32xf32>, vector<32x96xf32>, vector<8x96xf32> -> vector<8x96xf32>
    %c0_4 = arith.constant 0 : index
    %c0_5 = arith.constant 0 : index
    %4 = vector.load %arg5[%c0_4, %c0_5] : memref<1x96xf32, #tpu.memory_space<vmem>>, vector<1x96xf32>
    %5 = vector.broadcast %4 : vector<1x96xf32> to vector<8x96xf32>
    %6 = arith.addf %3, %5 : vector<8x96xf32>
    %7 = vector.extract_strided_slice %6 {offsets = [0, 0], sizes = [8, 32], strides = [1, 1]} : vector<8x96xf32> to vector<8x32xf32>
    %cst_6 = arith.constant 0.353553385 : f32
    %8 = vector.broadcast %cst_6 : f32 to vector<8x32xf32>
    %9 = arith.mulf %7, %8 : vector<8x32xf32>
    %10 = vector.extract_strided_slice %6 {offsets = [0, 32], sizes = [8, 32], strides = [1, 1]} : vector<8x96xf32> to vector<8x32xf32>
    %11 = vector.extract_strided_slice %6 {offsets = [0, 64], sizes = [8, 32], strides = [1, 1]} : vector<8x96xf32> to vector<8x32xf32>
    %c0_7 = arith.constant 0 : index
    %c0_8 = arith.constant 0 : index
    %c0_9 = arith.constant 0 : index
    %12 = vector.load %arg2[%c0_7, %c0_8, %c0_9] : memref<1x1x8xf32, #tpu.memory_space<vmem>>, vector<1x1x8xf32>
    %13 = vector.shape_cast %12 : vector<1x1x8xf32> to vector<1x8xf32>
    %14 = vector.shape_cast %13 : vector<1x8xf32> to vector<1x8xf32>
    %15 = vector.broadcast %14 : vector<1x8xf32> to vector<8x8xf32>
    %16 = vector.extract_strided_slice %9 {offsets = [0, 0], sizes = [8, 8], strides = [1, 1]} : vector<8x32xf32> to vector<8x8xf32>
    %17 = vector.extract_strided_slice %10 {offsets = [0, 0], sizes = [8, 8], strides = [1, 1]} : vector<8x32xf32> to vector<8x8xf32>
    %18 = vector.extract_strided_slice %11 {offsets = [0, 0], sizes = [8, 8], strides = [1, 1]} : vector<8x32xf32> to vector<8x8xf32>
    %cst_10 = arith.constant dense<0.000000e+00> : vector<8x8xf32>
    %19 = tpu.matmul %16, %17, %cst_10 {dimension_numbers = #tpu.dot_dimension_numbers<[1], [1], [0], [0], [0, 0, 1, 0], [], []>} : vector<8x8xf32>, vector<8x8xf32>, vector<8x8xf32> -> vector<8x8xf32>
    %20 = arith.addf %19, %15 : vector<8x8xf32>
    %cst_11 = arith.constant dense<0xFF800000> : vector<8xf32>
    %21 = vector.multi_reduction <maximumf>, %20, %cst_11 [1] : vector<8x8xf32> to vector<8xf32>
    %22 = vector.shape_cast %21 : vector<8xf32> to vector<8x1xf32>
    %23 = vector.broadcast %22 : vector<8x1xf32> to vector<8x8xf32>
    %24 = arith.subf %20, %23 : vector<8x8xf32>
    %25 = math.exp %24 : vector<8x8xf32>
    %cst_12 = arith.constant dense<0.000000e+00> : vector<8xf32>
    %26 = vector.multi_reduction <add>, %25, %cst_12 [1] : vector<8x8xf32> to vector<8xf32>
    %27 = vector.shape_cast %26 : vector<8xf32> to vector<8x1xf32>
    %cst_13 = arith.constant dense<0.000000e+00> : vector<8x8xf32>
    %28 = tpu.matmul %25, %18, %cst_13 {dimension_numbers = #tpu.dot_dimension_numbers<[1], [0], [0], [1], [0, 0, 1, 1], [], []>} : vector<8x8xf32>, vector<8x8xf32>, vector<8x8xf32> -> vector<8x8xf32>
    %29 = tpu.reciprocal %27 {approx = true} : vector<8x1xf32> -> vector<8x1xf32>
    %30 = vector.broadcast %29 : vector<8x1xf32> to vector<8x8xf32>
    %31 = arith.mulf %28, %30 : vector<8x8xf32>
    %c0_14 = arith.constant 0 : index
    %c0_15 = arith.constant 0 : index
    %32 = vector.load %arg8[%c0_14, %c0_15] : memref<8x32xf32, #tpu.memory_space<vmem>>, vector<8x8xf32>
    tpu.vector_store %arg8[%c0_14, %c0_15], %31 {strides = array<i32>} : memref<8x32xf32, #tpu.memory_space<vmem>>, vector<8x8xf32>,
    %33 = vector.extract_strided_slice %9 {offsets = [0, 8], sizes = [8, 8], strides = [1, 1]} : vector<8x32xf32> to vector<8x8xf32>
    %34 = vector.extract_strided_slice %10 {offsets = [0, 8], sizes = [8, 8], strides = [1, 1]} : vector<8x32xf32> to vector<8x8xf32>
    %35 = vector.extract_strided_slice %11 {offsets = [0, 8], sizes = [8, 8], strides = [1, 1]} : vector<8x32xf32> to vector<8x8xf32>
    %cst_16 = arith.constant dense<0.000000e+00> : vector<8x8xf32>
    %36 = tpu.matmul %33, %34, %cst_16 {dimension_numbers = #tpu.dot_dimension_numbers<[1], [1], [0], [0], [0, 0, 1, 0], [], []>} : vector<8x8xf32>, vector<8x8xf32>, vector<8x8xf32> -> vector<8x8xf32>
    %37 = arith.addf %36, %15 : vector<8x8xf32>
    %cst_17 = arith.constant dense<0xFF800000> : vector<8xf32>
    %38 = vector.multi_reduction <maximumf>, %37, %cst_17 [1] : vector<8x8xf32> to vector<8xf32>
    %39 = vector.shape_cast %38 : vector<8xf32> to vector<8x1xf32>
    %40 = vector.broadcast %39 : vector<8x1xf32> to vector<8x8xf32>
    %41 = arith.subf %37, %40 : vector<8x8xf32>
    %42 = math.exp %41 : vector<8x8xf32>
    %cst_18 = arith.constant dense<0.000000e+00> : vector<8xf32>
    %43 = vector.multi_reduction <add>, %42, %cst_18 [1] : vector<8x8xf32> to vector<8xf32>
    %44 = vector.shape_cast %43 : vector<8xf32> to vector<8x1xf32>
    %cst_19 = arith.constant dense<0.000000e+00> : vector<8x8xf32>
    %45 = tpu.matmul %42, %35, %cst_19 {dimension_numbers = #tpu.dot_dimension_numbers<[1], [0], [0], [1], [0, 0, 1, 1], [], []>} : vector<8x8xf32>, vector<8x8xf32>, vector<8x8xf32> -> vector<8x8xf32>
    %46 = tpu.reciprocal %44 {approx = true} : vector<8x1xf32> -> vector<8x1xf32>
    %47 = vector.broadcast %46 : vector<8x1xf32> to vector<8x8xf32>
    %48 = arith.mulf %45, %47 : vector<8x8xf32>
    %c0_20 = arith.constant 0 : index
    %c8 = arith.constant 8 : index
    %49 = vector.load %arg8[%c0_20, %c8] : memref<8x32xf32, #tpu.memory_space<vmem>>, vector<8x8xf32>
    tpu.vector_store %arg8[%c0_20, %c8], %48 {strides = array<i32>} : memref<8x32xf32, #tpu.memory_space<vmem>>, vector<8x8xf32>,
    %50 = vector.extract_strided_slice %9 {offsets = [0, 16], sizes = [8, 8], strides = [1, 1]} : vector<8x32xf32> to vector<8x8xf32>
    %51 = vector.extract_strided_slice %10 {offsets = [0, 16], sizes = [8, 8], strides = [1, 1]} : vector<8x32xf32> to vector<8x8xf32>
    %52 = vector.extract_strided_slice %11 {offsets = [0, 16], sizes = [8, 8], strides = [1, 1]} : vector<8x32xf32> to vector<8x8xf32>
    %cst_21 = arith.constant dense<0.000000e+00> : vector<8x8xf32>
    %53 = tpu.matmul %50, %51, %cst_21 {dimension_numbers = #tpu.dot_dimension_numbers<[1], [1], [0], [0], [0, 0, 1, 0], [], []>} : vector<8x8xf32>, vector<8x8xf32>, vector<8x8xf32> -> vector<8x8xf32>
    %54 = arith.addf %53, %15 : vector<8x8xf32>
    %cst_22 = arith.constant dense<0xFF800000> : vector<8xf32>
    %55 = vector.multi_reduction <maximumf>, %54, %cst_22 [1] : vector<8x8xf32> to vector<8xf32>
    %56 = vector.shape_cast %55 : vector<8xf32> to vector<8x1xf32>
    %57 = vector.broadcast %56 : vector<8x1xf32> to vector<8x8xf32>
    %58 = arith.subf %54, %57 : vector<8x8xf32>
    %59 = math.exp %58 : vector<8x8xf32>
    %cst_23 = arith.constant dense<0.000000e+00> : vector<8xf32>
    %60 = vector.multi_reduction <add>, %59, %cst_23 [1] : vector<8x8xf32> to vector<8xf32>
    %61 = vector.shape_cast %60 : vector<8xf32> to vector<8x1xf32>
    %cst_24 = arith.constant dense<0.000000e+00> : vector<8x8xf32>
    %62 = tpu.matmul %59, %52, %cst_24 {dimension_numbers = #tpu.dot_dimension_numbers<[1], [0], [0], [1], [0, 0, 1, 1], [], []>} : vector<8x8xf32>, vector<8x8xf32>, vector<8x8xf32> -> vector<8x8xf32>
    %63 = tpu.reciprocal %61 {approx = true} : vector<8x1xf32> -> vector<8x1xf32>
    %64 = vector.broadcast %63 : vector<8x1xf32> to vector<8x8xf32>
    %65 = arith.mulf %62, %64 : vector<8x8xf32>
    %c0_25 = arith.constant 0 : index
    %c16 = arith.constant 16 : index
    %66 = vector.load %arg8[%c0_25, %c16] : memref<8x32xf32, #tpu.memory_space<vmem>>, vector<8x8xf32>
    tpu.vector_store %arg8[%c0_25, %c16], %65 {strides = array<i32>} : memref<8x32xf32, #tpu.memory_space<vmem>>, vector<8x8xf32>,
    %67 = vector.extract_strided_slice %9 {offsets = [0, 24], sizes = [8, 8], strides = [1, 1]} : vector<8x32xf32> to vector<8x8xf32>
    %68 = vector.extract_strided_slice %10 {offsets = [0, 24], sizes = [8, 8], strides = [1, 1]} : vector<8x32xf32> to vector<8x8xf32>
    %69 = vector.extract_strided_slice %11 {offsets = [0, 24], sizes = [8, 8], strides = [1, 1]} : vector<8x32xf32> to vector<8x8xf32>
    %cst_26 = arith.constant dense<0.000000e+00> : vector<8x8xf32>
    %70 = tpu.matmul %67, %68, %cst_26 {dimension_numbers = #tpu.dot_dimension_numbers<[1], [1], [0], [0], [0, 0, 1, 0], [], []>} : vector<8x8xf32>, vector<8x8xf32>, vector<8x8xf32> -> vector<8x8xf32>
    %71 = arith.addf %70, %15 : vector<8x8xf32>
    %cst_27 = arith.constant dense<0xFF800000> : vector<8xf32>
    %72 = vector.multi_reduction <maximumf>, %71, %cst_27 [1] : vector<8x8xf32> to vector<8xf32>
    %73 = vector.shape_cast %72 : vector<8xf32> to vector<8x1xf32>
    %74 = vector.broadcast %73 : vector<8x1xf32> to vector<8x8xf32>
    %75 = arith.subf %71, %74 : vector<8x8xf32>
    %76 = math.exp %75 : vector<8x8xf32>
    %cst_28 = arith.constant dense<0.000000e+00> : vector<8xf32>
    %77 = vector.multi_reduction <add>, %76, %cst_28 [1] : vector<8x8xf32> to vector<8xf32>
    %78 = vector.shape_cast %77 : vector<8xf32> to vector<8x1xf32>
    %cst_29 = arith.constant dense<0.000000e+00> : vector<8x8xf32>
    %79 = tpu.matmul %76, %69, %cst_29 {dimension_numbers = #tpu.dot_dimension_numbers<[1], [0], [0], [1], [0, 0, 1, 1], [], []>} : vector<8x8xf32>, vector<8x8xf32>, vector<8x8xf32> -> vector<8x8xf32>
    %80 = tpu.reciprocal %78 {approx = true} : vector<8x1xf32> -> vector<8x1xf32>
    %81 = vector.broadcast %80 : vector<8x1xf32> to vector<8x8xf32>
    %82 = arith.mulf %79, %81 : vector<8x8xf32>
    %c0_30 = arith.constant 0 : index
    %c24 = arith.constant 24 : index
    %83 = vector.load %arg8[%c0_30, %c24] : memref<8x32xf32, #tpu.memory_space<vmem>>, vector<8x8xf32>
    tpu.vector_store %arg8[%c0_30, %c24], %82 {strides = array<i32>} : memref<8x32xf32, #tpu.memory_space<vmem>>, vector<8x8xf32>,
    %c0_31 = arith.constant 0 : index
    %c0_32 = arith.constant 0 : index
    %84 = vector.load %arg8[%c0_31, %c0_32] : memref<8x32xf32, #tpu.memory_space<vmem>>, vector<8x32xf32>
    %c0_33 = arith.constant 0 : index
    %c0_34 = arith.constant 0 : index
    %85 = vector.load %arg4[%c0_33, %c0_34] : memref<32x32xf32, #tpu.memory_space<vmem>>, vector<32x32xf32>
    %cst_35 = arith.constant dense<0.000000e+00> : vector<8x32xf32>
    %86 = tpu.matmul %84, %85, %cst_35 {dimension_numbers = #tpu.dot_dimension_numbers<[1], [0], [0], [1], [0, 0, 1, 1], [], []>} : vector<8x32xf32>, vector<32x32xf32>, vector<8x32xf32> -> vector<8x32xf32>
    %c0_36 = arith.constant 0 : index
    %c0_37 = arith.constant 0 : index
    %87 = vector.load %arg6[%c0_36, %c0_37] : memref<1x32xf32, #tpu.memory_space<vmem>>, vector<1x32xf32>
    %88 = vector.broadcast %87 : vector<1x32xf32> to vector<8x32xf32>
    %89 = arith.addf %86, %88 : vector<8x32xf32>
    %c0_38 = arith.constant 0 : index
    %c0_39 = arith.constant 0 : index
    %c0_40 = arith.constant 0 : index
    %90 = vector.load %arg7[%c0_38, %c0_39, %c0_40] : memref<1x8x32xf32, #tpu.memory_space<vmem>>, vector<1x8x32xf32>
    %91 = vector.shape_cast %90 : vector<1x8x32xf32> to vector<8x32xf32>
    %92 = vector.shape_cast %89 : vector<8x32xf32> to vector<1x8x32xf32>
    tpu.vector_store %arg7[%c0_38, %c0_39, %c0_40], %92 {strides = array<i32>} : memref<1x8x32xf32, #tpu.memory_space<vmem>>, vector<1x8x32xf32>,
    return
  }
  func.func @transform_0(%arg0: i32) -> (i32, i32, i32) {
    %c0_i32 = arith.constant 0 : i32
    %c0_i32_0 = arith.constant 0 : i32
    %c0_i32_1 = arith.constant 0 : i32
    return %arg0, %c0_i32, %c0_i32_0 : i32, i32, i32
  }
  func.func @transform_1(%arg0: i32) -> (i32, i32, i32) {
    %c0_i32 = arith.constant 0 : i32
    %c0_i32_0 = arith.constant 0 : i32
    %c0_i32_1 = arith.constant 0 : i32
    return %arg0, %c0_i32, %c0_i32_0 : i32, i32, i32
  }
  func.func @transform_2(%arg0: i32) -> (i32, i32) {
    %c0_i32 = arith.constant 0 : i32
    %c0_i32_0 = arith.constant 0 : i32
    %c0_i32_1 = arith.constant 0 : i32
    return %c0_i32, %c0_i32_0 : i32, i32
  }
  func.func @transform_3(%arg0: i32) -> (i32, i32) {
    %c0_i32 = arith.constant 0 : i32
    %c0_i32_0 = arith.constant 0 : i32
    %c0_i32_1 = arith.constant 0 : i32
    return %c0_i32, %c0_i32_0 : i32, i32
  }
  func.func @transform_4(%arg0: i32) -> (i32, i32) {
    %c0_i32 = arith.constant 0 : i32
    %c0_i32_0 = arith.constant 0 : i32
    %c0_i32_1 = arith.constant 0 : i32
    return %c0_i32, %c0_i32_0 : i32, i32
  }
  func.func @transform_5(%arg0: i32) -> (i32, i32) {
    %c0_i32 = arith.constant 0 : i32
    %c0_i32_0 = arith.constant 0 : i32
    %c0_i32_1 = arith.constant 0 : i32
    return %c0_i32, %c0_i32_0 : i32, i32
  }
  func.func @transform_6(%arg0: i32) -> (i32, i32, i32) {
    %c0_i32 = arith.constant 0 : i32
    %c0_i32_0 = arith.constant 0 : i32
    %c0_i32_1 = arith.constant 0 : i32
    return %arg0, %c0_i32, %c0_i32_0 : i32, i32, i32
  }
}

</mosaic_0001>

<bundles_post_ra>
// kernel: tpu_custom_call.1
= control target key start
LH: loop header
LB: loop body
LE: loop exit
PB: predicated region body
PF: predicated region fallthrough
CT: control target
= control target key end

     0   :  { %s1417_s0 = inlined_call_operand.hbm [shape: f32[2,8,32], index: 0, kind: input, shape index: {}]   ;;  %s1418_s1 = inlined_call_operand.hbm [shape: f32[2,1,8], index: 1, kind: input, shape index: {}]   ;;  %s1419_s2 = inlined_call_operand.hbm [shape: f32[32,96], index: 2, kind: input, shape index: {}]   ;;  %s1420_s3 = inlined_call_operand.hbm [shape: f32[32,32], index: 3, kind: input, shape index: {}]   ;;  %s1421_s4 = inlined_call_operand.vmem [shape: f32[1,96], index: 4, kind: input, shape index: {}]   ;;  %s1422_s5 = inlined_call_operand.vmem [shape: f32[1,32], index: 5, kind: input, shape index: {}]   ;;  %s1423_s6 = inlined_call_operand.hbm [shape: f32[2,8,32], index: 6, kind: output, shape index: {}]  }
   0x1   :  { %1425 = sst [smem:[#allocation19_spill]] %s1419_s2 }
   0x2   :  { %1426 = sst [smem:[#allocation20_spill]] %s1420_s3 }
   0x3   :  { %11 = vsyncpa [#allocation4], 0 }
   0x4   :  { %13 = vsyncpa [#allocation4 + $0x1], 0 }
   0x5   :  { %14 = vsyncpa [#allocation7], 0 }
   0x6   :  { %16 = vsyncpa [#allocation7 + $0x1], 0 }
   0x7   :  { %17 = vsyncpa [#allocation10], 0 }
   0x8   :  { %18 = vsyncpa [#allocation5], 0 }
   0x9   :  { %20 = vsyncpa [#allocation5 + $0x1], 0  ;;  %s1202_s21 = smov 0   ;;  %s1204_s22 = smov 0  }
   0xa   :  { %s1206_s23 = smov 0   ;;  %s1208_s24 = smov 0  }
   0xb LB: > { %1427 = sst [smem:[#allocation17_spill]] %s1143_s23  ;;  %s1226_s28 = sadd.s32 4294967295, %s1147_s24   ;;  %s1147_s24 = sphi %s1208_s24, %s1442_s24   ;;  %s1143_s23 = sphi %s1206_s23, %s1439_s23   ;;  %s1139_s22 = sphi %s1204_s22, %s1441_s22   ;;  %s1135_s21 = sphi %s1202_s21, %s1440_s21  }
   0xc   : > { %s1428_s2 = sld [smem:[#allocation19_spill]]  ;;  %p813_p0 = scmp.ge.s32.totalorder %s1147_s24, 1 }
   0xd   : > { %p47_p1 = scmp.eq.s32.totalorder %s1226_s28, 0  ;;  %p193_p2 = scmp.lt.s32.totalorder %s1147_s24, 3 }
   0xe   : > { %s1149_s30 = smov [#allocation8]   ;;  %s1430_s3 = sld [smem:[#allocation20_spill]] }
   0xf   : > { %p1231_p3 = pnand %p813_p0, %p193_p2  ;;  %s206_s7 = sshll.u32 %s1149_s30, 4  ;;  %s207_s7 = int_to_ptr.vmem [resolvable:$true] %s206_s7 }
  0x10   : > { %s1150_s11 = smov [#allocation9]   ;;  %s1151_s13 = smov 128  }
  0x11   : > { %p856_p4 = pneg %p1231_p3  ;;  %s220_s12 = sshll.u32 %s1150_s11, 4  ;;  %s221_s12 = int_to_ptr.vmem [resolvable:$true] %s220_s12 }
  0x12   : > { %s204_s27 = sshll.u32 %s1428_s2, 4  ;;  %s1152_s14 = smov 8   ;;  %s205_s27 = int_to_ptr.hbm [resolvable:$true] %s204_s27 }
  0x13   : > { %p857_p6 = pnand %p856_p4, %p47_p1  ;;  %s812_s15 = sadd.s32 4294967294, %s1147_s24  }
  0x14   : > { %s218_s10 = sshll.u32 %s1430_s3, 4  ;;  %s1245_s16 = sadd.s32 1, %s1147_s24   ;;  %s219_s10 = int_to_ptr.hbm [resolvable:$true] %s218_s10 }
  0x15   : > { %859 = dma.hbm_to_vmem [thread:$0]  (!%p857_p6), %s205_s27, 512, %s207_s7, [#allocation7], %s1151_s13, %s1151_s13, %s1152_s14  }
  0x16   : > { %862 = dma.hbm_to_vmem [thread:$0]  (!%p857_p6), %s219_s10, 512, %s221_s12, [#allocation10], %s1151_s13, %s1151_s13, %s1152_s14  }
  0x17   : > { %s30_s17 = ssub.s32 %s1147_s24, %s1245_s16  ;;  %s33_s18 = sadd.s32 1, %s1143_s23 }
  0x18   : > { %p31_p7 = scmp.eq.s32.totalorder %s30_s17, 0  ;;  %p40_p8 = scmp.ne.s32.totalorder %s1143_s23, %s1139_s22 }
  0x19   : > { %p41_p9 = scmp.eq.s32.totalorder %s1147_s24, 0  ;;  %p46_p10 = scmp.ne.s32.totalorder %s1139_s22, %s1135_s21 }
  0x1a   : > { %s1256_s19 = scalar_select %p31_p7, %s1143_s23, %s33_s18  }
  0x1b   : > { %p1258_p11 = por %p41_p9, %p40_p8  ;;  %p1264_p12 = por %p47_p1, %p46_p10 }
  0x1c   : > { %1431 = sst [smem:[#allocation18_spill]] %s1256_s19  ;;  %p180_p13 = scmp.eq.s32.totalorder %s1226_s28, 1 }
  0x1d   : > { %p186_p0 = scmp.eq.s32.totalorder %s812_s15, 1  ;;  %p876_p2 = scmp.lt.s32.totalorder %s1147_s24, 2 }
  0x1e   : > { %s1271_s26 = sand.u32 1, %s1143_s23   ;;  %p1273_p4 = por %p180_p13, %p40_p8 }
  0x1f   : > { %p1277_p6 = por %p186_p0, %p46_p10  ;;  %s817_s7 = sshll.u32 %s1271_s26, 3 }
  0x20   : > { %s818_s8 = sshll.u32 %s1147_s24, 3  ;;  %s244_s12 = scalar_lea.vmem [#allocation3], %s817_s7 }
  0x21   : > { %s248_s11 = scalar_lea.hbm %s1417_s0, %s818_s8  ;;  %s252_s13 = sshll.u32 %s244_s12, 4  ;;  %s253_s13 = int_to_ptr.vmem [resolvable:$true] %s252_s13 }
  0x22   : > { %s250_s14 = sshll.u32 %s248_s11, 4  ;;  %p1288_p7 = pnand %p876_p2, %p1258_p11  ;;  %s251_s14 = int_to_ptr.hbm [resolvable:$true] %s250_s14 }
  0x23   : > { %s259_s17 = sand.u32 1, %s1147_s24   ;;  %s241_s18 = scalar_lea.sflag [#allocation4], %s1271_s26 }
  0x24   : > { %s1009_s2 = sshra.s32 %s251_s14, 4  ;;  %p1013_p9 = pneg %p1288_p7  ;;  %s1010_s2 = int_to_ptr.hbm [resolvable:$true] %s1009_s2 }
  0x25   : > { %s1011_s3 = scalar_lea.hbm %s1010_s2, 8  ;;  %s1016_s8 = scalar_lea.hbm %s1417_s0, 16 }
  0x26   : > { %p1012_p8 = scmp.ne.s32.totalorder %s1010_s2, %s1011_s3  ;;  %p1017_p11 = scmp.lt.s32.totalorder %s1010_s2, %s1417_s0 }
  0x27   : > { %p1018_p0 = scmp.lt.s32.totalorder %s1016_s8, %s1011_s3 }
  0x28   : > { %p1014_p10 = pnand %p1013_p9, %p1012_p8 }
  0x29   : > { %p1019_p2 = por %p1018_p0, %p1017_p11 }
  0x2a   : > { %p1015_p13 = pneg %p1014_p10 }
  0x2c   : > { %p1020_p5 = pnand %p1019_p2, %p1015_p13 }
  0x2e   : > { %1023 = shalt.err (!%p1020_p5)
}
  0x2f   : > { %866 = dma.hbm_to_vmem [thread:$0]  (!%p1288_p7), %s251_s14, 128, %s253_s13, %s241_s18  }
  0x30   : > { %s265_s19 = scalar_lea.hbm %s1418_s1, %s1147_s24  ;;  %s262_s7 = scalar_lea.vmem [#allocation6], %s1271_s26 }
  0x31   : > { %s269_s20 = sshll.u32 %s262_s7, 4  ;;  %s267_s23 = sshll.u32 %s265_s19, 4  ;;  %s270_s20 = int_to_ptr.vmem [resolvable:$true] %s269_s20  ;;  %s268_s23 = int_to_ptr.hbm [resolvable:$true] %s267_s23 }
  0x32   : > { %s260_s2 = scalar_lea.sflag [#allocation7], %s259_s17  ;;  %s1039_s3 = sshra.s32 %s268_s23, 4  ;;  %s1040_s3 = int_to_ptr.hbm [resolvable:$true] %s1039_s3 }
  0x33   : > { %s1041_s8 = scalar_lea.hbm %s1040_s3, 1  ;;  %s1046_s14 = scalar_lea.hbm %s1418_s1, 2 }
  0x34   : > { %p1042_p5 = scmp.ne.s32.totalorder %s1040_s3, %s1041_s8  ;;  %p1047_p13 = scmp.lt.s32.totalorder %s1040_s3, %s1418_s1 }
  0x35   : > { %p1048_p11 = scmp.lt.s32.totalorder %s1046_s14, %s1041_s8 }
  0x36   : > { %p1044_p8 = pnand %p1042_p5, %p1013_p9 }
  0x37   : > { %p1049_p0 = por %p1048_p11, %p1047_p13 }
  0x38   : > { %p1045_p10 = pneg %p1044_p8 }
  0x3a   : > { %p1050_p2 = pnand %p1049_p0, %p1045_p10 }
  0x3c   : > { %1053 = shalt.err (!%p1050_p2)
}
  0x3d   : > { %869 = dma.hbm_to_vmem [thread:$0]  (!%p1288_p7), %s268_s23, 16, %s270_s20, %s260_s2  }
  0x3e   : > { %278 = sbr.rel (%p1231_p3) target bundleno = 1002 (0x3ea), region = 44  ;;  %s1326_s19 = sand.u32 (!%p1231_p3), 1, %s1139_s22  }
  0x3f   : > { %s820_s26 = sshll.u32 (!%p1231_p3), %s1326_s19, 3  ;;  %s281_s17 = scalar_lea.sflag (!%p1231_p3), [#allocation4], %s1326_s19 }
  0x40   : > { %s284_s11 = scalar_lea.vmem (!%p1231_p3), [#allocation3], %s820_s26 }
  0x43   : > { %1114 = dma.done.wait (%p1264_p12), %s281_s17, 128  }
  0x44   : > { %1116 = vsyncadd (%p1264_p12), %s281_s17, 4294967168  ;;  %s290_s23 = sand.u32 1, %s1226_s28   ;;  %s293_s15 = scalar_lea.vmem [#allocation6], %s1326_s19 }
  0x45   : > { %s291_s29 = scalar_lea.sflag [#allocation7], %s290_s23 }
  0x46   : > { %1118 = dma.done.wait (%p1264_p12), %s291_s29, 16  }
  0x47   : > { %1120 = vsyncadd (%p1264_p12), %s291_s29, 4294967280 }
  0x48   : > { %1122 = dma.done.wait (%p47_p1), [#allocation7], 512  }
  0x49   : > { %1124 = vsyncadd (%p47_p1), [#allocation7], 4294966784 }
  0x4a   : > { %1126 = dma.done.wait (%p47_p1), [#allocation10], 512  }
  0x4b   : > { %1128 = vsyncadd (%p47_p1), [#allocation10], 4294966784  ;;  %v341_v0 = vld [vmem:[#allocation8 + $0x18] sm:$0xff]  ;;  %v340_v1 = vld [vmem:[#allocation8 + $0x10] sm:$0xff]  ;;  %vm346_vm0 = vcmask 261120   ;;  %s1153_s7 = smov 72  }
  0x4c   : > { %362 = vmatpush.msra.mxu0 %v341_v0  ;;  %v339_v2 = vld [vmem:[#allocation8 + $0x8] sm:$0xff]  ;;  %v338_v3 = vld [vmem:[#allocation8] sm:$0xff]  ;;  %s1154_s20 = smov 96   ;;  %s1155_s2 = smov 120   ;;  %vm378_vm1 = vcmask 64512   ;;  %vm511_vm2 = vcmask 130112  }
  0x4d   : > { %v337_v4 = vld [vmem:[%s284_s11] sm:$0xff]  ;;  %v930_v5 = vld [vmem:[%s1421_s4] ss:$0 sm:$0xff]  ;;  %s1156_s3 = smov 88   ;;  %s1157_s8 = smov 112   ;;  %vm582_vm3 = vcmask 195712  }
  0x4e   : > { %363 = vmatpush.msra.mxu0 %v340_v1  ;;  %s1158_s9 = smov 80   ;;  %s1159_s13 = smov 104   ;;  %v931_v17 = vld [vmem:[%s293_s15] ss:$0 sm:$0xff]  ;;  %vm653_vm4 = vcmask 261312  }
  0x4f   : > { %s1160_s14 = smov 64   ;;  %s1161_s18 = smov 56  }
  0x50   : > { %364 = vmatpush.msra.mxu0 %v339_v2  ;;  %s1162_s10 = smov 40   ;;  %s1163_s17 = smov 48  }
  0x51   : > { %s1164_s11 = smov 16   ;;  %s1165_s23 = smov 8  }
  0x52   : > { %365 = vmatpush.msra.mxu0 %v338_v3  ;;  %s1166_s29 = smov 24   ;;  %s839_s15 = sshll.u32 %s1226_s28, 3 }
  0x53   : > { %824 = vmatmul.msk.f32.vlgmr.msra.gmra.mxu0 %vm346_vm0, %v337_v4  ;;  %s689_s28 = scalar_lea.sflag [#allocation5], %s1326_s19 }
  0xd0   : > { %v367_v6 = vpop.f32.mrf.mxu0 }
  0xd1   : > { %v368_v7 = vadd.f32 %v930_v5, %v367_v6  ;;  %v659_v6 = vld [vmem:[#allocation9 + $0x18] sm:$0xff] }
  0xd3   : > { %586 = vrot.lane.b32.xlu2 %v368_v7, %s1153_s7  ;;  %376 = vrot.lane.b32.xlu0 %v368_v7, %s1154_s20  ;;  %v370_v8 = vmul.f32 0.35355338, %v368_v7  ;;  %s699_s7 = scalar_lea.hbm %s1423_s6, %s839_s15 }
  0xd5   : > { %442 = vrot.lane.b32.xlu1 %v370_v8, %s1155_s2 }
  0xdb   : > { %444 = vrot.lane.b32.xlu0 %v368_v7, %s1156_s3  ;;  %513 = vrot.lane.b32.xlu2 %v370_v8, %s1157_s8  ;;  %s336_s3 = scalar_lea.vmem [#allocation11], %s820_s26  ;;  %s1089_s26 = scalar_lea.hbm %s1423_s6, 16 }
  0xdc   : > { %s701_s8 = sshll.u32 %s336_s3, 4  ;;  %s702_s8 = int_to_ptr.vmem [resolvable:$true] %s701_s8 }
  0xdd   : > { %515 = vrot.lane.b32.xlu1 %v368_v7, %s1158_s9  ;;  %s703_s9 = sshll.u32 %s699_s7, 4  ;;  %s704_s9 = int_to_ptr.hbm [resolvable:$true] %s703_s9 }
  0xe3   : > { %584 = vrot.lane.b32.xlu0 %v370_v8, %s1159_s13  ;;  %s1083_s13 = sshra.s32 %s704_s9, 4  ;;  %s1084_s13 = int_to_ptr.hbm [resolvable:$true] %s1083_s13 }
  0xe4   : > { %p1090_p7 = scmp.lt.s32.totalorder %s1084_s13, %s1423_s6 }
  0xeb   : > { %413 = vrot.lane.b32.xlu0 %v368_v7, %s1160_s14  ;;  %s1085_s14 = scalar_lea.hbm %s1084_s13, 8 }
  0xec   : > { %p1086_p1 = scmp.ne.s32.totalorder %s1084_s13, %s1085_s14  ;;  %p1091_p9 = scmp.lt.s32.totalorder %s1089_s26, %s1085_s14 }
  0xee   : > { %p1087_p3 = pnand %p1086_p1, %p1273_p4  ;;  %p1092_p5 = por %p1091_p9, %p1090_p7 }
  0xf0   : > { %p1088_p12 = pneg %p1087_p3 }
  0xf2   : > { %p1093_p8 = pnand %p1092_p5, %p1088_p12 }
 0x12d   : > { %v587_v9 = vpop.permute.xlu2 %586 }
 0x12e   : > { %834 = vmatpush.xpose.msk.msrb.mxu0 %vm378_vm1, %v587_v9  ;;  %v656_v9 = vld [vmem:[#allocation9] sm:$0xff] }
 0x135   : > { %v514_v14 = vpop.permute.xlu2 %513 }
 0x145   : > { %v377_v10 = vpop.permute.xlu0 %376 }
 0x146   : > { %825 = vmatpush.xpose.msk.msra.mxu1 %vm378_vm1, %v377_v10 }
 0x147   : > { %v443_v11 = vpop.permute.xlu1 %442 }
 0x149   : > { %826 = vmatmul.msk.f32.vlgmr.msra.gmra.mxu1 %vm378_vm1, %v370_v8  ;;  %v657_v8 = vld [vmem:[#allocation9 + $0x8] sm:$0xff] }
 0x14d   : > { %v445_v12 = vpop.permute.xlu0 %444 }
 0x14e   : > { %828 = vmatpush.xpose.msk.msra.mxu3 %vm378_vm1, %v445_v12 }
 0x14f   : > { %v516_v13 = vpop.permute.xlu1 %515 }
 0x150   : > { %831 = vmatpush.xpose.msk.msrb.mxu1 %vm378_vm1, %v516_v13  ;;  %v932_v13 = vld [vmem:[%s1422_s5] ss:$0 sm:$0xff] }
 0x151   : > { %829 = vmatmul.msk.f32.vlgmr.msra.gmra.mxu3 %vm378_vm1, %v443_v11 }
 0x153   : > { %832 = vmatmul.msk.f32.vlgmr.msrb.gmra.mxu1 %vm378_vm1, %v514_v14 }
 0x154   : > { %679 = vmatpush.msra.mxu1 %v659_v6 }
 0x155   : > { %v585_v15 = vpop.permute.xlu0 %584 }
 0x156   : > { %835 = vmatmul.msk.f32.vlgmr.msrb.gmra.mxu0 %vm378_vm1, %v585_v15 }
 0x15d   : > { %v414_v16 = vpop.permute.xlu0 %413 }
 0x15e   : > { %434 = vmatpush.msra.mxu2 %v414_v16 }
 0x1c6   : > { %v401_v18 = vpop.f32.mrf.mxu1 }
 0x1c7   : > { %v402_v19 = vadd.f32 %v931_v17, %v401_v18 }
 0x1c9   : > { %v404_v20 = vsel %vm378_vm1, %v402_v19, -inf }
 0x1ca   : > { %405 = vmax.xlane.f32.xlu1 %v404_v20 }
 0x1d0   : > { %v538_v21 = vpop.f32.mrf.mxu1 }
 0x1d1   : > { %v539_v22 = vadd.f32 %v931_v17, %v538_v21 }
 0x1d3   : > { %v609_v23 = vpop.f32.mrf.mxu0  ;;  %v541_v24 = vsel %vm378_vm1, %v539_v22, -inf }
 0x1d4   : > { %v610_v25 = vadd.f32 %v931_v17, %v609_v23  ;;  %542 = vmax.xlane.f32.xlu0 %v541_v24  ;;  %v467_v27 = vpop.f32.mrf.mxu3 }
 0x1d5   : > { %v468_v28 = vadd.f32 %v931_v17, %v467_v27 }
 0x1d6   : > { %v612_v26 = vsel %vm378_vm1, %v610_v25, -inf }
 0x1d7   : > { %613 = vmax.xlane.f32.xlu2 %v612_v26  ;;  %v470_v29 = vsel %vm378_vm1, %v468_v28, -inf }
 0x1df   : > { %471 = vmax.xlane.f32.xlu2 %v470_v29 }
 0x1e3   : > { %479 = vrot.lane.b32.xlu1 %v368_v7, %s1161_s18 }
 0x1e8   : > { %621 = vrot.lane.b32.xlu0 %v368_v7, %s1162_s10 }
 0x1f7   : > { %550 = vrot.lane.b32.xlu2 %v368_v7, %s1163_s17  ;;  %v658_v7 = vld [vmem:[#allocation9 + $0x10] sm:$0xff] }
 0x1f8   : > { %680 = vmatpush.msra.mxu1 %v658_v7 }
 0x1fa   : > { %681 = vmatpush.msra.mxu1 %v657_v8 }
 0x1fc   : > { %682 = vmatpush.msra.mxu1 %v656_v9 }
 0x23d   : > { %v406_v30 = vpop.xlane.xlu1 %405 }
 0x23e   : > { %v407_v31 = vsub.f32 %v402_v19, %v406_v30 }
 0x240   : > { %v408_v32 = vmul.f32 1.442695, %v407_v31 }
 0x242   : > { %933 = vpow2.f32 %v408_v32 }
 0x247   : > { %v543_v33 = vpop.xlane.xlu0 %542 }
 0x248   : > { %v934_v34 = vpop.eup %933  ;;  %v544_v35 = vsub.f32 %v539_v22, %v543_v33 }
 0x249   : > { %827 = vmatmul.msk.f32.vlgmr.msra.gmra.mxu2 %vm378_vm1, %v934_v34  ;;  %v410_v52 = vsel %vm378_vm1, %v934_v34, 0.0 }
 0x24a   : > { %v545_v36 = vmul.f32 1.442695, %v544_v35  ;;  %v614_v37 = vpop.xlane.xlu2 %613 }
 0x24b   : > { %v615_v38 = vsub.f32 %v610_v25, %v614_v37 }
 0x24c   : > { %935 = vpow2.f32 %v545_v36 }
 0x24d   : > { %v616_v39 = vmul.f32 1.442695, %v615_v38 }
 0x24f   : > { %937 = vpow2.f32 %v616_v39 }
 0x252   : > { %v936_v40 = vpop.eup %935  ;;  %v472_v41 = vpop.xlane.xlu2 %471 }
 0x253   : > { %v473_v42 = vsub.f32 %v468_v28, %v472_v41  ;;  %v547_v43 = vsel %vm378_vm1, %v936_v40, 0.0 }
 0x254   : > { %548 = vadd.xlane.f32.xlu2 %v547_v43 }
 0x255   : > { %v938_v44 = vpop.eup %937  ;;  %v474_v45 = vmul.f32 1.442695, %v473_v42  ;;  %v480_v46 = vpop.permute.xlu1 %479 }
 0x256   : > { %500 = vmatpush.msrb.mxu2 %v480_v46  ;;  %v618_v47 = vsel %vm378_vm1, %v938_v44, 0.0 }
 0x257   : > { %939 = vpow2.f32 %v474_v45  ;;  %619 = vadd.xlane.f32.xlu0 %v618_v47 }
 0x25a   : > { %v551_v48 = vpop.permute.xlu2 %550  ;;  %v622_v49 = vpop.permute.xlu0 %621 }
 0x25b   : > { %571 = vmatpush.msrb.mxu3 %v551_v48  ;;  %642 = vmatpush.msra.mxu2 %v622_v49 }
 0x25c   : > { %833 = vmatmul.msk.f32.vlgmr.msrb.gmra.mxu3 %vm378_vm1, %v936_v40 }
 0x25d   : > { %v940_v50 = vpop.eup %939 }
 0x25e   : > { %830 = vmatmul.msk.f32.vlgmr.msrb.gmra.mxu2 %vm378_vm1, %v940_v50  ;;  %v476_v51 = vsel %vm378_vm1, %v940_v50, 0.0 }
 0x25f   : > { %477 = vadd.xlane.f32.xlu1 %v476_v51 }
 0x266   : > { %836 = vmatmul.msk.f32.vlgmr.msra.gmra.mxu2 %vm378_vm1, %v938_v44 }
 0x267   : > { %411 = vadd.xlane.f32.xlu1 %v410_v52 }
 0x2c7   : > { %v549_v54 = vpop.xlane.xlu2 %548 }
 0x2c8   : > { %941 = vrcp.f32 %v549_v54 }
 0x2ca   : > { %v620_v60 = vpop.xlane.xlu0 %619 }
 0x2cc   : > { %v436_v55 = vpop.f32.mrf.mxu2 }
 0x2ce   : > { %v942_v57 = vpop.eup %941 }
 0x2d2   : > { %v478_v53 = vpop.xlane.xlu1 %477 }
 0x2d3   : > { %943 = vrcp.f32 %v478_v53 }
 0x2d9   : > { %v944_v59 = vpop.eup %943 }
 0x2da   : > { %v412_v56 = vpop.xlane.xlu1 %411 }
 0x2db   : > { %945 = vrcp.f32 %v412_v56 }
 0x2dc   : > { %947 = vrcp.f32 %v620_v60 }
 0x2df   : > { %v573_v58 = vpop.f32.mrf.mxu3 }
 0x2e0   : > { %v577_v61 = vmul.f32 %v942_v57, %v573_v58 }
 0x2e1   : > { %v946_v62 = vpop.eup %945  ;;  %v502_v63 = vpop.f32.mrf.mxu2 }
 0x2e2   : > { %v440_v0 = vmul.f32 %v946_v62, %v436_v55  ;;  %v506_v1 = vmul.f32 %v944_v59, %v502_v63  ;;  %579 = vrot.lane.b32.xlu1 %v577_v61, %s1164_s11  ;;  %v948_v2 = vpop.eup %947 }
 0x2e4   : > { %441 = vst.msk [vmem:[#allocation2] sm:$0xff] %vm378_vm1, %v440_v0  ;;  %508 = vrot.lane.b32.xlu2 %v506_v1, %s1165_s23 }
 0x2e9   : > { %v644_v3 = vpop.f32.mrf.mxu2 }
 0x2ea   : > { %v648_v4 = vmul.f32 %v948_v2, %v644_v3 }
 0x2ec   : > { %650 = vrot.lane.b32.xlu0 %v648_v4, %s1166_s29 }
 0x33e   : > { %v509_v5 = vpop.permute.xlu2 %508 }
 0x33f   : > { %512 = vst.msk [vmem:[#allocation2] sm:$0xff] %vm511_vm2, %v509_v5 }
 0x354   : > { %v580_v10 = vpop.permute.xlu1 %579 }
 0x355   : > { %583 = vst.msk [vmem:[#allocation2] sm:$0xff] %vm582_vm3, %v580_v10 }
 0x35e   : > { %v651_v11 = vpop.permute.xlu0 %650 }
 0x35f   : > { %654 = vst.msk [vmem:[#allocation2] sm:$0xff] %vm653_vm4, %v651_v11 }
 0x366   : > { %v655_v12 = vld [vmem:[#allocation2] sm:$0xff] }
 0x367   : > { %837 = vmatmul.msk.f32.vlgmr.msra.gmra.mxu1 %vm346_vm0, %v655_v12 }
 0x3e4   : > { %v684_v14 = vpop.f32.mrf.mxu1 }
 0x3e5   : > { %v685_v15 = vadd.f32 %v932_v13, %v684_v14 }
 0x3e7   : > { %687 = vst.msk [vmem:[%s336_s3] sm:$0xff] %vm346_vm0, %v685_v15 }
 0x3e8   : > { %1096 = shalt.err (!%p1093_p8)
}
 0x3e9   : > { %854 = dma.vmem_to_hbm [thread:$0]  (%p1273_p4), %s702_s8, 128, %s704_s9, %s689_s28  }
 0x3ea PF: > { %s715_s19 = sand.u32 1, %s1135_s21   ;;  %p1437_p10 = scmp.ge.s32.totalorder %s1147_s24, 2 }
 0x3eb   : > { %s716_s23 = scalar_lea.sflag [#allocation5], %s715_s19 }
 0x3ec   : > { %p871_p13 = pnand %p1437_p10, %p1277_p6 }
 0x3ee   : > { %p872_p11 = pneg %p871_p13 }
 0x3f0   : > { %1130 = dma.done.wait (%p872_p11), %s716_s23, 128  }
 0x3f1   : > { %1132 = vsyncadd (%p872_p11), %s716_s23, 4294967168  ;;  %s1438_s29 = sld [smem:[#allocation17_spill]]  ;;  %p23_p0 = scmp.ge.s32.totalorder %s1245_s16, 4  }
 0x3f2   : > { %s1439_s23 = sld [smem:[#allocation18_spill]]  ;;  %s1440_s21 = smov %s1139_s22 }
 0x3f3   : > { %s1442_s24 = smov %s1245_s16  ;;  %25 = sbr.rel (!%p23_p0) target bundleno = 11 (0xb), region = 110 }
 0x3f7   : > { %s1441_s22 = smov %s1438_s29 }
 0x3f8   :  { %722 = vsyncpa [#allocation4], 1 }
 0x3f9   :  { %724 = vsyncpa [#allocation4 + $0x1], 1 }
 0x3fa   :  { %725 = vsyncpa [#allocation7], 1 }
 0x3fb   :  { %727 = vsyncpa [#allocation7 + $0x1], 1 }
 0x3fc   :  { %728 = vsyncpa [#allocation10], 1 }
 0x3fd   :  { %729 = vsyncpa [#allocation5], 1 }
 0x3fe   :  { %731 = vsyncpa [#allocation5 + $0x1], 1 }

// kernel: tpu_custom_call.1
= control target key start
LH: loop header
LB: loop body
LE: loop exit
PB: predicated region body
PF: predicated region fallthrough
CT: control target
= control target key end

     0   :  { %s1417_s0 = inlined_call_operand.hbm [shape: f32[2,8,32], index: 0, kind: input, shape index: {}]   ;;  %s1418_s1 = inlined_call_operand.hbm [shape: f32[2,1,8], index: 1, kind: input, shape index: {}]   ;;  %s1419_s2 = inlined_call_operand.hbm [shape: f32[32,96], index: 2, kind: input, shape index: {}]   ;;  %s1420_s3 = inlined_call_operand.hbm [shape: f32[32,32], index: 3, kind: input, shape index: {}]   ;;  %s1421_s4 = inlined_call_operand.vmem [shape: f32[1,96], index: 4, kind: input, shape index: {}]   ;;  %s1422_s5 = inlined_call_operand.vmem [shape: f32[1,32], index: 5, kind: input, shape index: {}]   ;;  %s1423_s6 = inlined_call_operand.hbm [shape: f32[2,8,32], index: 6, kind: output, shape index: {}]  }
   0x1   :  { %1425 = sst [smem:[#allocation19_spill]] %s1419_s2 }
   0x2   :  { %1426 = sst [smem:[#allocation20_spill]] %s1420_s3 }
   0x3   :  { %11 = vsyncpa [#allocation4], 0 }
   0x4   :  { %13 = vsyncpa [#allocation4 + $0x1], 0 }
   0x5   :  { %14 = vsyncpa [#allocation7], 0 }
   0x6   :  { %16 = vsyncpa [#allocation7 + $0x1], 0 }
   0x7   :  { %17 = vsyncpa [#allocation10], 0 }
   0x8   :  { %18 = vsyncpa [#allocation5], 0 }
   0x9   :  { %20 = vsyncpa [#allocation5 + $0x1], 0  ;;  %s1202_s21 = smov 0   ;;  %s1204_s22 = smov 0  }
   0xa   :  { %s1206_s23 = smov 0   ;;  %s1208_s24 = smov 0  }
   0xb LB: > { %1427 = sst [smem:[#allocation17_spill]] %s1143_s23  ;;  %s1226_s28 = sadd.s32 4294967295, %s1147_s24   ;;  %s1147_s24 = sphi %s1208_s24, %s1442_s24   ;;  %s1143_s23 = sphi %s1206_s23, %s1439_s23   ;;  %s1139_s22 = sphi %s1204_s22, %s1441_s22   ;;  %s1135_s21 = sphi %s1202_s21, %s1440_s21  }
   0xc   : > { %s1428_s2 = sld [smem:[#allocation19_spill]]  ;;  %p813_p0 = scmp.ge.s32.totalorder %s1147_s24, 1 }
   0xd   : > { %p47_p1 = scmp.eq.s32.totalorder %s1226_s28, 0  ;;  %p193_p2 = scmp.lt.s32.totalorder %s1147_s24, 3 }
   0xe   : > { %s1149_s30 = smov [#allocation8]   ;;  %s1430_s3 = sld [smem:[#allocation20_spill]] }
   0xf   : > { %p1231_p3 = pnand %p813_p0, %p193_p2  ;;  %s206_s7 = sshll.u32 %s1149_s30, 4  ;;  %s207_s7 = int_to_ptr.vmem [resolvable:$true] %s206_s7 }
  0x10   : > { %s1150_s11 = smov [#allocation9]   ;;  %s1151_s13 = smov 128  }
  0x11   : > { %p856_p4 = pneg %p1231_p3  ;;  %s220_s12 = sshll.u32 %s1150_s11, 4  ;;  %s221_s12 = int_to_ptr.vmem [resolvable:$true] %s220_s12 }
  0x12   : > { %s204_s27 = sshll.u32 %s1428_s2, 4  ;;  %s1152_s14 = smov 8   ;;  %s205_s27 = int_to_ptr.hbm [resolvable:$true] %s204_s27 }
  0x13   : > { %p857_p6 = pnand %p856_p4, %p47_p1  ;;  %s812_s15 = sadd.s32 4294967294, %s1147_s24  }
  0x14   : > { %s218_s10 = sshll.u32 %s1430_s3, 4  ;;  %s1245_s16 = sadd.s32 1, %s1147_s24   ;;  %s219_s10 = int_to_ptr.hbm [resolvable:$true] %s218_s10 }
  0x15   : > { %859 = dma.hbm_to_vmem [thread:$0]  (!%p857_p6), %s205_s27, 512, %s207_s7, [#allocation7], %s1151_s13, %s1151_s13, %s1152_s14  }
  0x16   : > { %862 = dma.hbm_to_vmem [thread:$0]  (!%p857_p6), %s219_s10, 512, %s221_s12, [#allocation10], %s1151_s13, %s1151_s13, %s1152_s14  }
  0x17   : > { %s30_s17 = ssub.s32 %s1147_s24, %s1245_s16  ;;  %s33_s18 = sadd.s32 1, %s1143_s23 }
  0x18   : > { %p31_p7 = scmp.eq.s32.totalorder %s30_s17, 0  ;;  %p40_p8 = scmp.ne.s32.totalorder %s1143_s23, %s1139_s22 }
  0x19   : > { %p41_p9 = scmp.eq.s32.totalorder %s1147_s24, 0  ;;  %p46_p10 = scmp.ne.s32.totalorder %s1139_s22, %s1135_s21 }
  0x1a   : > { %s1256_s19 = scalar_select %p31_p7, %s1143_s23, %s33_s18  }
  0x1b   : > { %p1258_p11 = por %p41_p9, %p40_p8  ;;  %p1264_p12 = por %p47_p1, %p46_p10 }
  0x1c   : > { %1431 = sst [smem:[#allocation18_spill]] %s1256_s19  ;;  %p180_p13 = scmp.eq.s32.totalorder %s1226_s28, 1 }
  0x1d   : > { %p186_p0 = scmp.eq.s32.totalorder %s812_s15, 1  ;;  %p876_p2 = scmp.lt.s32.totalorder %s1147_s24, 2 }
  0x1e   : > { %s1271_s26 = sand.u32 1, %s1143_s23   ;;  %p1273_p4 = por %p180_p13, %p40_p8 }
  0x1f   : > { %p1277_p6 = por %p186_p0, %p46_p10  ;;  %s817_s7 = sshll.u32 %s1271_s26, 3 }
  0x20   : > { %s818_s8 = sshll.u32 %s1147_s24, 3  ;;  %s244_s12 = scalar_lea.vmem [#allocation3], %s817_s7 }
  0x21   : > { %s248_s11 = scalar_lea.hbm %s1417_s0, %s818_s8  ;;  %s252_s13 = sshll.u32 %s244_s12, 4  ;;  %s253_s13 = int_to_ptr.vmem [resolvable:$true] %s252_s13 }
  0x22   : > { %s250_s14 = sshll.u32 %s248_s11, 4  ;;  %p1288_p7 = pnand %p876_p2, %p1258_p11  ;;  %s251_s14 = int_to_ptr.hbm [resolvable:$true] %s250_s14 }
  0x23   : > { %s259_s17 = sand.u32 1, %s1147_s24   ;;  %s241_s18 = scalar_lea.sflag [#allocation4], %s1271_s26 }
  0x24   : > { %s1009_s2 = sshra.s32 %s251_s14, 4  ;;  %p1013_p9 = pneg %p1288_p7  ;;  %s1010_s2 = int_to_ptr.hbm [resolvable:$true] %s1009_s2 }
  0x25   : > { %s1011_s3 = scalar_lea.hbm %s1010_s2, 8  ;;  %s1016_s8 = scalar_lea.hbm %s1417_s0, 16 }
  0x26   : > { %p1012_p8 = scmp.ne.s32.totalorder %s1010_s2, %s1011_s3  ;;  %p1017_p11 = scmp.lt.s32.totalorder %s1010_s2, %s1417_s0 }
  0x27   : > { %p1018_p0 = scmp.lt.s32.totalorder %s1016_s8, %s1011_s3 }
  0x28   : > { %p1014_p10 = pnand %p1013_p9, %p1012_p8 }
  0x29   : > { %p1019_p2 = por %p1018_p0, %p1017_p11 }
  0x2a   : > { %p1015_p13 = pneg %p1014_p10 }
  0x2c   : > { %p1020_p5 = pnand %p1019_p2, %p1015_p13 }
  0x2e   : > { %1023 = shalt.err (!%p1020_p5)
}
  0x2f   : > { %866 = dma.hbm_to_vmem [thread:$0]  (!%p1288_p7), %s251_s14, 128, %s253_s13, %s241_s18  }
  0x30   : > { %s265_s19 = scalar_lea.hbm %s1418_s1, %s1147_s24  ;;  %s262_s7 = scalar_lea.vmem [#allocation6], %s1271_s26 }
  0x31   : > { %s269_s20 = sshll.u32 %s262_s7, 4  ;;  %s267_s23 = sshll.u32 %s265_s19, 4  ;;  %s270_s20 = int_to_ptr.vmem [resolvable:$true] %s269_s20  ;;  %s268_s23 = int_to_ptr.hbm [resolvable:$true] %s267_s23 }
  0x32   : > { %s260_s2 = scalar_lea.sflag [#allocation7], %s259_s17  ;;  %s1039_s3 = sshra.s32 %s268_s23, 4  ;;  %s1040_s3 = int_to_ptr.hbm [resolvable:$true] %s1039_s3 }
  0x33   : > { %s1041_s8 = scalar_lea.hbm %s1040_s3, 1  ;;  %s1046_s14 = scalar_lea.hbm %s1418_s1, 2 }
  0x34   : > { %p1042_p5 = scmp.ne.s32.totalorder %s1040_s3, %s1041_s8  ;;  %p1047_p13 = scmp.lt.s32.totalorder %s1040_s3, %s1418_s1 }
  0x35   : > { %p1048_p11 = scmp.lt.s32.totalorder %s1046_s14, %s1041_s8 }
  0x36   : > { %p1044_p8 = pnand %p1042_p5, %p1013_p9 }
  0x37   : > { %p1049_p0 = por %p1048_p11, %p1047_p13 }
  0x38   : > { %p1045_p10 = pneg %p1044_p8 }
  0x3a   : > { %p1050_p2 = pnand %p1049_p0, %p1045_p10 }
  0x3c   : > { %1053 = shalt.err (!%p1050_p2)
}
  0x3d   : > { %869 = dma.hbm_to_vmem [thread:$0]  (!%p1288_p7), %s268_s23, 16, %s270_s20, %s260_s2  }
  0x3e   : > { %278 = sbr.rel (%p1231_p3) target bundleno = 1002 (0x3ea), region = 44  ;;  %s1326_s19 = sand.u32 (!%p1231_p3), 1, %s1139_s22  }
  0x3f   : > { %s820_s26 = sshll.u32 (!%p1231_p3), %s1326_s19, 3  ;;  %s281_s17 = scalar_lea.sflag (!%p1231_p3), [#allocation4], %s1326_s19 }
  0x40   : > { %s284_s11 = scalar_lea.vmem (!%p1231_p3), [#allocation3], %s820_s26 }
  0x43   : > { %1114 = dma.done.wait (%p1264_p12), %s281_s17, 128  }
  0x44   : > { %1116 = vsyncadd (%p1264_p12), %s281_s17, 4294967168  ;;  %s290_s23 = sand.u32 1, %s1226_s28   ;;  %s293_s15 = scalar_lea.vmem [#allocation6], %s1326_s19 }
  0x45   : > { %s291_s29 = scalar_lea.sflag [#allocation7], %s290_s23 }
  0x46   : > { %1118 = dma.done.wait (%p1264_p12), %s291_s29, 16  }
  0x47   : > { %1120 = vsyncadd (%p1264_p12), %s291_s29, 4294967280 }
  0x48   : > { %1122 = dma.done.wait (%p47_p1), [#allocation7], 512  }
  0x49   : > { %1124 = vsyncadd (%p47_p1), [#allocation7], 4294966784 }
  0x4a   : > { %1126 = dma.done.wait (%p47_p1), [#allocation10], 512  }
  0x4b   : > { %1128 = vsyncadd (%p47_p1), [#allocation10], 4294966784  ;;  %v341_v0 = vld [vmem:[#allocation8 + $0x18] sm:$0xff]  ;;  %v340_v1 = vld [vmem:[#allocation8 + $0x10] sm:$0xff]  ;;  %vm346_vm0 = vcmask 261120   ;;  %s1153_s7 = smov 72  }
  0x4c   : > { %362 = vmatpush.msra.mxu0 %v341_v0  ;;  %v339_v2 = vld [vmem:[#allocation8 + $0x8] sm:$0xff]  ;;  %v338_v3 = vld [vmem:[#allocation8] sm:$0xff]  ;;  %s1154_s20 = smov 96   ;;  %s1155_s2 = smov 120   ;;  %vm378_vm1 = vcmask 64512   ;;  %vm511_vm2 = vcmask 130112  }
  0x4d   : > { %v337_v4 = vld [vmem:[%s284_s11] sm:$0xff]  ;;  %v930_v5 = vld [vmem:[%s1421_s4] ss:$0 sm:$0xff]  ;;  %s1156_s3 = smov 88   ;;  %s1157_s8 = smov 112   ;;  %vm582_vm3 = vcmask 195712  }
  0x4e   : > { %363 = vmatpush.msra.mxu0 %v340_v1  ;;  %s1158_s9 = smov 80   ;;  %s1159_s13 = smov 104   ;;  %v931_v17 = vld [vmem:[%s293_s15] ss:$0 sm:$0xff]  ;;  %vm653_vm4 = vcmask 261312  }
  0x4f   : > { %s1160_s14 = smov 64   ;;  %s1161_s18 = smov 56  }
  0x50   : > { %364 = vmatpush.msra.mxu0 %v339_v2  ;;  %s1162_s10 = smov 40   ;;  %s1163_s17 = smov 48  }
  0x51   : > { %s1164_s11 = smov 16   ;;  %s1165_s23 = smov 8  }
  0x52   : > { %365 = vmatpush.msra.mxu0 %v338_v3  ;;  %s1166_s29 = smov 24   ;;  %s839_s15 = sshll.u32 %s1226_s28, 3 }
  0x53   : > { %824 = vmatmul.msk.f32.vlgmr.msra.gmra.mxu0 %vm346_vm0, %v337_v4  ;;  %s689_s28 = scalar_lea.sflag [#allocation5], %s1326_s19 }
  0xd0   : > { %v367_v6 = vpop.f32.mrf.mxu0 }
  0xd1   : > { %v368_v7 = vadd.f32 %v930_v5, %v367_v6  ;;  %v659_v6 = vld [vmem:[#allocation9 + $0x18] sm:$0xff] }
  0xd3   : > { %586 = vrot.lane.b32.xlu2 %v368_v7, %s1153_s7  ;;  %376 = vrot.lane.b32.xlu0 %v368_v7, %s1154_s20  ;;  %v370_v8 = vmul.f32 0.35355338, %v368_v7  ;;  %s699_s7 = scalar_lea.hbm %s1423_s6, %s839_s15 }
  0xd5   : > { %442 = vrot.lane.b32.xlu1 %v370_v8, %s1155_s2 }
  0xdb   : > { %444 = vrot.lane.b32.xlu0 %v368_v7, %s1156_s3  ;;  %513 = vrot.lane.b32.xlu2 %v370_v8, %s1157_s8  ;;  %s336_s3 = scalar_lea.vmem [#allocation11], %s820_s26  ;;  %s1089_s26 = scalar_lea.hbm %s1423_s6, 16 }
  0xdc   : > { %s701_s8 = sshll.u32 %s336_s3, 4  ;;  %s702_s8 = int_to_ptr.vmem [resolvable:$true] %s701_s8 }
  0xdd   : > { %515 = vrot.lane.b32.xlu1 %v368_v7, %s1158_s9  ;;  %s703_s9 = sshll.u32 %s699_s7, 4  ;;  %s704_s9 = int_to_ptr.hbm [resolvable:$true] %s703_s9 }
  0xe3   : > { %584 = vrot.lane.b32.xlu0 %v370_v8, %s1159_s13  ;;  %s1083_s13 = sshra.s32 %s704_s9, 4  ;;  %s1084_s13 = int_to_ptr.hbm [resolvable:$true] %s1083_s13 }
  0xe4   : > { %p1090_p7 = scmp.lt.s32.totalorder %s1084_s13, %s1423_s6 }
  0xeb   : > { %413 = vrot.lane.b32.xlu0 %v368_v7, %s1160_s14  ;;  %s1085_s14 = scalar_lea.hbm %s1084_s13, 8 }
  0xec   : > { %p1086_p1 = scmp.ne.s32.totalorder %s1084_s13, %s1085_s14  ;;  %p1091_p9 = scmp.lt.s32.totalorder %s1089_s26, %s1085_s14 }
  0xee   : > { %p1087_p3 = pnand %p1086_p1, %p1273_p4  ;;  %p1092_p5 = por %p1091_p9, %p1090_p7 }
  0xf0   : > { %p1088_p12 = pneg %p1087_p3 }
  0xf2   : > { %p1093_p8 = pnand %p1092_p5, %p1088_p12 }
 0x12d   : > { %v587_v9 = vpop.permute.xlu2 %586 }
 0x12e   : > { %834 = vmatpush.xpose.msk.msrb.mxu0 %vm378_vm1, %v587_v9  ;;  %v656_v9 = vld [vmem:[#allocation9] sm:$0xff] }
 0x135   : > { %v514_v14 = vpop.permute.xlu2 %513 }
 0x145   : > { %v377_v10 = vpop.permute.xlu0 %376 }
 0x146   : > { %825 = vmatpush.xpose.msk.msra.mxu1 %vm378_vm1, %v377_v10 }
 0x147   : > { %v443_v11 = vpop.permute.xlu1 %442 }
 0x149   : > { %826 = vmatmul.msk.f32.vlgmr.msra.gmra.mxu1 %vm378_vm1, %v370_v8  ;;  %v657_v8 = vld [vmem:[#allocation9 + $0x8] sm:$0xff] }
 0x14d   : > { %v445_v12 = vpop.permute.xlu0 %444 }
 0x14e   : > { %828 = vmatpush.xpose.msk.msra.mxu3 %vm378_vm1, %v445_v12 }
 0x14f   : > { %v516_v13 = vpop.permute.xlu1 %515 }
 0x150   : > { %831 = vmatpush.xpose.msk.msrb.mxu1 %vm378_vm1, %v516_v13  ;;  %v932_v13 = vld [vmem:[%s1422_s5] ss:$0 sm:$0xff] }
 0x151   : > { %829 = vmatmul.msk.f32.vlgmr.msra.gmra.mxu3 %vm378_vm1, %v443_v11 }
 0x153   : > { %832 = vmatmul.msk.f32.vlgmr.msrb.gmra.mxu1 %vm378_vm1, %v514_v14 }
 0x154   : > { %679 = vmatpush.msra.mxu1 %v659_v6 }
 0x155   : > { %v585_v15 = vpop.permute.xlu0 %584 }
 0x156   : > { %835 = vmatmul.msk.f32.vlgmr.msrb.gmra.mxu0 %vm378_vm1, %v585_v15 }
 0x15d   : > { %v414_v16 = vpop.permute.xlu0 %413 }
 0x15e   : > { %434 = vmatpush.msra.mxu2 %v414_v16 }
 0x1c6   : > { %v401_v18 = vpop.f32.mrf.mxu1 }
 0x1c7   : > { %v402_v19 = vadd.f32 %v931_v17, %v401_v18 }
 0x1c9   : > { %v404_v20 = vsel %vm378_vm1, %v402_v19, -inf }
 0x1ca   : > { %405 = vmax.xlane.f32.xlu1 %v404_v20 }
 0x1d0   : > { %v538_v21 = vpop.f32.mrf.mxu1 }
 0x1d1   : > { %v539_v22 = vadd.f32 %v931_v17, %v538_v21 }
 0x1d3   : > { %v609_v23 = vpop.f32.mrf.mxu0  ;;  %v541_v24 = vsel %vm378_vm1, %v539_v22, -inf }
 0x1d4   : > { %v610_v25 = vadd.f32 %v931_v17, %v609_v23  ;;  %542 = vmax.xlane.f32.xlu0 %v541_v24  ;;  %v467_v27 = vpop.f32.mrf.mxu3 }
 0x1d5   : > { %v468_v28 = vadd.f32 %v931_v17, %v467_v27 }
 0x1d6   : > { %v612_v26 = vsel %vm378_vm1, %v610_v25, -inf }
 0x1d7   : > { %613 = vmax.xlane.f32.xlu2 %v612_v26  ;;  %v470_v29 = vsel %vm378_vm1, %v468_v28, -inf }
 0x1df   : > { %471 = vmax.xlane.f32.xlu2 %v470_v29 }
 0x1e3   : > { %479 = vrot.lane.b32.xlu1 %v368_v7, %s1161_s18 }
 0x1e8   : > { %621 = vrot.lane.b32.xlu0 %v368_v7, %s1162_s10 }
 0x1f7   : > { %550 = vrot.lane.b32.xlu2 %v368_v7, %s1163_s17  ;;  %v658_v7 = vld [vmem:[#allocation9 + $0x10] sm:$0xff] }
 0x1f8   : > { %680 = vmatpush.msra.mxu1 %v658_v7 }
 0x1fa   : > { %681 = vmatpush.msra.mxu1 %v657_v8 }
 0x1fc   : > { %682 = vmatpush.msra.mxu1 %v656_v9 }
 0x23d   : > { %v406_v30 = vpop.xlane.xlu1 %405 }
 0x23e   : > { %v407_v31 = vsub.f32 %v402_v19, %v406_v30 }
 0x240   : > { %v408_v32 = vmul.f32 1.442695, %v407_v31 }
 0x242   : > { %933 = vpow2.f32 %v408_v32 }
 0x247   : > { %v543_v33 = vpop.xlane.xlu0 %542 }
 0x248   : > { %v934_v34 = vpop.eup %933  ;;  %v544_v35 = vsub.f32 %v539_v22, %v543_v33 }
 0x249   : > { %827 = vmatmul.msk.f32.vlgmr.msra.gmra.mxu2 %vm378_vm1, %v934_v34  ;;  %v410_v52 = vsel %vm378_vm1, %v934_v34, 0.0 }
 0x24a   : > { %v545_v36 = vmul.f32 1.442695, %v544_v35  ;;  %v614_v37 = vpop.xlane.xlu2 %613 }
 0x24b   : > { %v615_v38 = vsub.f32 %v610_v25, %v614_v37 }
 0x24c   : > { %935 = vpow2.f32 %v545_v36 }
 0x24d   : > { %v616_v39 = vmul.f32 1.442695, %v615_v38 }
 0x24f   : > { %937 = vpow2.f32 %v616_v39 }
 0x252   : > { %v936_v40 = vpop.eup %935  ;;  %v472_v41 = vpop.xlane.xlu2 %471 }
 0x253   : > { %v473_v42 = vsub.f32 %v468_v28, %v472_v41  ;;  %v547_v43 = vsel %vm378_vm1, %v936_v40, 0.0 }
 0x254   : > { %548 = vadd.xlane.f32.xlu2 %v547_v43 }
 0x255   : > { %v938_v44 = vpop.eup %937  ;;  %v474_v45 = vmul.f32 1.442695, %v473_v42  ;;  %v480_v46 = vpop.permute.xlu1 %479 }
 0x256   : > { %500 = vmatpush.msrb.mxu2 %v480_v46  ;;  %v618_v47 = vsel %vm378_vm1, %v938_v44, 0.0 }
 0x257   : > { %939 = vpow2.f32 %v474_v45  ;;  %619 = vadd.xlane.f32.xlu0 %v618_v47 }
 0x25a   : > { %v551_v48 = vpop.permute.xlu2 %550  ;;  %v622_v49 = vpop.permute.xlu0 %621 }
 0x25b   : > { %571 = vmatpush.msrb.mxu3 %v551_v48  ;;  %642 = vmatpush.msra.mxu2 %v622_v49 }
 0x25c   : > { %833 = vmatmul.msk.f32.vlgmr.msrb.gmra.mxu3 %vm378_vm1, %v936_v40 }
 0x25d   : > { %v940_v50 = vpop.eup %939 }
 0x25e   : > { %830 = vmatmul.msk.f32.vlgmr.msrb.gmra.mxu2 %vm378_vm1, %v940_v50  ;;  %v476_v51 = vsel %vm378_vm1, %v940_v50, 0.0 }
 0x25f   : > { %477 = vadd.xlane.f32.xlu1 %v476_v51 }
 0x266   : > { %836 = vmatmul.msk.f32.vlgmr.msra.gmra.mxu2 %vm378_vm1, %v938_v44 }
 0x267   : > { %411 = vadd.xlane.f32.xlu1 %v410_v52 }
 0x2c7   : > { %v549_v54 = vpop.xlane.xlu2 %548 }
 0x2c8   : > { %941 = vrcp.f32 %v549_v54 }
 0x2ca   : > { %v620_v60 = vpop.xlane.xlu0 %619 }
 0x2cc   : > { %v436_v55 = vpop.f32.mrf.mxu2 }
 0x2ce   : > { %v942_v57 = vpop.eup %941 }
 0x2d2   : > { %v478_v53 = vpop.xlane.xlu1 %477 }
 0x2d3   : > { %943 = vrcp.f32 %v478_v53 }
 0x2d9   : > { %v944_v59 = vpop.eup %943 }
 0x2da   : > { %v412_v56 = vpop.xlane.xlu1 %411 }
 0x2db   : > { %945 = vrcp.f32 %v412_v56 }
 0x2dc   : > { %947 = vrcp.f32 %v620_v60 }
 0x2df   : > { %v573_v58 = vpop.f32.mrf.mxu3 }
 0x2e0   : > { %v577_v61 = vmul.f32 %v942_v57, %v573_v58 }
 0x2e1   : > { %v946_v62 = vpop.eup %945  ;;  %v502_v63 = vpop.f32.mrf.mxu2 }
 0x2e2   : > { %v440_v0 = vmul.f32 %v946_v62, %v436_v55  ;;  %v506_v1 = vmul.f32 %v944_v59, %v502_v63  ;;  %579 = vrot.lane.b32.xlu1 %v577_v61, %s1164_s11  ;;  %v948_v2 = vpop.eup %947 }
 0x2e4   : > { %441 = vst.msk [vmem:[#allocation2] sm:$0xff] %vm378_vm1, %v440_v0  ;;  %508 = vrot.lane.b32.xlu2 %v506_v1, %s1165_s23 }
 0x2e9   : > { %v644_v3 = vpop.f32.mrf.mxu2 }
 0x2ea   : > { %v648_v4 = vmul.f32 %v948_v2, %v644_v3 }
 0x2ec   : > { %650 = vrot.lane.b32.xlu0 %v648_v4, %s1166_s29 }
 0x33e   : > { %v509_v5 = vpop.permute.xlu2 %508 }
 0x33f   : > { %512 = vst.msk [vmem:[#allocation2] sm:$0xff] %vm511_vm2, %v509_v5 }
 0x354   : > { %v580_v10 = vpop.permute.xlu1 %579 }
 0x355   : > { %583 = vst.msk [vmem:[#allocation2] sm:$0xff] %vm582_vm3, %v580_v10 }
 0x35e   : > { %v651_v11 = vpop.permute.xlu0 %650 }
 0x35f   : > { %654 = vst.msk [vmem:[#allocation2] sm:$0xff] %vm653_vm4, %v651_v11 }
 0x366   : > { %v655_v12 = vld [vmem:[#allocation2] sm:$0xff] }
 0x367   : > { %837 = vmatmul.msk.f32.vlgmr.msra.gmra.mxu1 %vm346_vm0, %v655_v12 }
 0x3e4   : > { %v684_v14 = vpop.f32.mrf.mxu1 }
 0x3e5   : > { %v685_v15 = vadd.f32 %v932_v13, %v684_v14 }
 0x3e7   : > { %687 = vst.msk [vmem:[%s336_s3] sm:$0xff] %vm346_vm0, %v685_v15 }
 0x3e8   : > { %1096 = shalt.err (!%p1093_p8)
}
 0x3e9   : > { %854 = dma.vmem_to_hbm [thread:$0]  (%p1273_p4), %s702_s8, 128, %s704_s9, %s689_s28  }
 0x3ea PF: > { %s715_s19 = sand.u32 1, %s1135_s21   ;;  %p1437_p10 = scmp.ge.s32.totalorder %s1147_s24, 2 }
 0x3eb   : > { %s716_s23 = scalar_lea.sflag [#allocation5], %s715_s19 }
 0x3ec   : > { %p871_p13 = pnand %p1437_p10, %p1277_p6 }
 0x3ee   : > { %p872_p11 = pneg %p871_p13 }
 0x3f0   : > { %1130 = dma.done.wait (%p872_p11), %s716_s23, 128  }
 0x3f1   : > { %1132 = vsyncadd (%p872_p11), %s716_s23, 4294967168  ;;  %s1438_s29 = sld [smem:[#allocation17_spill]]  ;;  %p23_p0 = scmp.ge.s32.totalorder %s1245_s16, 4  }
 0x3f2   : > { %s1439_s23 = sld [smem:[#allocation18_spill]]  ;;  %s1440_s21 = smov %s1139_s22 }
 0x3f3   : > { %s1442_s24 = smov %s1245_s16  ;;  %25 = sbr.rel (!%p23_p0) target bundleno = 11 (0xb), region = 110 }
 0x3f7   : > { %s1441_s22 = smov %s1438_s29 }
 0x3f8   :  { %722 = vsyncpa [#allocation4], 1 }
 0x3f9   :  { %724 = vsyncpa [#allocation4 + $0x1], 1 }
 0x3fa   :  { %725 = vsyncpa [#allocation7], 1 }
 0x3fb   :  { %727 = vsyncpa [#allocation7 + $0x1], 1 }
 0x3fc   :  { %728 = vsyncpa [#allocation10], 1 }
 0x3fd   :  { %729 = vsyncpa [#allocation5], 1 }
 0x3fe   :  { %731 = vsyncpa [#allocation5 + $0x1], 1 }

</bundles_post_ra>
